<compile_context>
chip_gen: v7x
topology: tpu7x:2x2x1
jax: 0.10.0
libtpu: 0.0.40
codegen_flags: <defaults>
</compile_context>

<pallas_src>
import functools
import numpy as np
import jax
import jax.numpy as jnp
from jax.experimental import pallas as pl
from jax.experimental.pallas import tpu as pltpu


def _vmem_limit_bytes():
    # Default scoped VMEM (16 MiB v5e / 32 MiB v6e,v7x) is far below physical;
    # raise it explicitly, leaving headroom for the compiler.
    try:
        cap = pltpu.get_tpu_info().vmem_capacity_bytes
    except Exception:
        cap = 64 * 1024 * 1024
    return min(int(cap * 0.85), 100 * 1024 * 1024)


# ----------------------------------------------------------------------------
# Pallas kernel: full PNA layer stack (message, 5 aggregators, 3 scalers,
# post_nn, lin, BatchNorm, ReLU), edge-chunked.
# ----------------------------------------------------------------------------
def pna_stack_kernel(didx_ref,                                  # SMEM: dst idx
                     x0_ref, src_ref, dst_ref, ea_ref,
                     invdeg_ref, amp_ref, att_ref, has_ref,
                     wpi_ref, wpj_ref, wef_ref, bf_ref,
                     wpx_ref, wagg_ref, bpost_ref,
                     wlin_ref, blin_ref, gamma_ref, beta_ref,
                     out_ref,
                     x_st, xw_st, acc_st, sq_st, mn_st, mx_st, m_st, agg_st,
                     *, n_edges):
    f32 = jnp.float32
    bf16 = jnp.bfloat16
    BIG = jnp.float32(1e30)
    Fp = out_ref.shape[1]
    tile_e = m_st.shape[0]

    l = pl.program_id(0)
    k = pl.program_id(1)
    k_last = pl.num_programs(1) - 1
    l_last = pl.num_programs(0) - 1

    def bdot(a, b):  # bf16 operands, f32 MXU accumulation
        return jnp.dot(a.astype(bf16), b.astype(bf16),
                       preferred_element_type=f32)

    def bdot_t(a, b):  # contract leading (edge) axis of both; no transpose copy
        return jax.lax.dot_general(a.astype(bf16), b.astype(bf16),
                                   dimension_numbers=(((0,), (0,)), ((), ())),
                                   preferred_element_type=f32)

    # ---- first iteration ever: seed the resident node state -----------------
    @pl.when(jnp.logical_and(l == 0, k == 0))
    def _():
        x_st[...] = x0_ref[...]

    # ---- layer start: per-layer invariants + accumulator reset --------------
    @pl.when(k == 0)
    def _():
        x = x_st[...]
        xw_st[0] = bdot(x, wpi_ref[0]).astype(bf16)   # x @ Wpre_i (gather via dst)
        xw_st[1] = bdot(x, wpj_ref[0]).astype(bf16)   # x @ Wpre_j (gather via src)
        acc_st[...] = jnp.zeros_like(acc_st)
        sq_st[...] = jnp.zeros_like(sq_st)
        mn_st[...] = jnp.full_like(mn_st, BIG)
        mx_st[...] = jnp.full_like(mx_st, -BIG)

    # ---- per edge-chunk: messages + running aggregation ----------------------
    src_oh = src_ref[...]                      # [tE, N] bf16 one-hot (source j)
    dst_oh = dst_ref[...]                      # [tE, N] bf16 one-hot (target i)
    m = (bdot(dst_oh, xw_st[0]) + bdot(src_oh, xw_st[1])
         + bdot(ea_ref[...], wef_ref[0]) + bf_ref[0])           # [tE, Fp] f32

    # scatter-sum onto destination nodes (one MXU contraction over the edge
    # axis; zero one-hot rows of padded edges contribute nothing).
    acc_st[...] += bdot_t(dst_oh, m)

    # Indexed per-edge updates: f32 sum-of-squares + running min/max.
    # Bounded to vreg-sized [1, Fp] temporaries (no [tE, N, Fp] broadcast).
    m_st[...] = m
    base = k * tile_e

    def mm_body(e, carry):
        @pl.when(base + e < n_edges)           # skip padded edges
        def _():
            row = didx_ref[base + e]           # SMEM scalar read (dst node id)
            me = m_st[pl.ds(e, 1), :]          # [1, Fp]
            rsel = pl.ds(row, 1)
            sq_st[rsel, :] = sq_st[rsel, :] + me * me          # f32 accumulate
            mn_st[rsel, :] = jnp.minimum(mn_st[rsel, :], me)
            mx_st[rsel, :] = jnp.maximum(mx_st[rsel, :], me)
        return carry

    jax.lax.fori_loop(0, tile_e, mm_body, 0)

    # ---- layer end: scalers, post_nn, lin, BatchNorm, ReLU -------------------
    @pl.when(k == k_last)
    def _():
        inv_deg = invdeg_ref[...]                               # [N, 1]
        has = has_ref[...] > 0.5                                # [N, 1]
        s_sum = acc_st[...]
        s_mean = s_sum * inv_deg
        s_msq = sq_st[...] * inv_deg
        s_std = jnp.sqrt(jnp.maximum(s_msq - s_mean * s_mean, 0.0) + 1e-5)
        s_min = jnp.where(has, mn_st[...], 0.0)
        s_max = jnp.where(has, mx_st[...], 0.0)

        # pack the 5 aggregations into one contiguous [N, 5*Fp] bf16 operand
        # and do a single K = 5*Fp contraction (better MXU fill on v6e/v7x).
        agg_st[:, 0 * Fp:1 * Fp] = s_mean.astype(jnp.bfloat16)
        agg_st[:, 1 * Fp:2 * Fp] = s_min.astype(jnp.bfloat16)
        agg_st[:, 2 * Fp:3 * Fp] = s_max.astype(jnp.bfloat16)
        agg_st[:, 3 * Fp:4 * Fp] = s_std.astype(jnp.bfloat16)
        agg_st[:, 4 * Fp:5 * Fp] = s_sum.astype(jnp.bfloat16)

        x = x_st[...]
        r = bdot(agg_st[...], wagg_ref[0])                      # [N, 3*Fp]
        post = (bdot(x, wpx_ref[0]) + r[:, 0:Fp]
                + amp_ref[...] * r[:, Fp:2 * Fp]
                + att_ref[...] * r[:, 2 * Fp:3 * Fp] + bpost_ref[0])
        y = bdot(post, wlin_ref[0]) + blin_ref[0]

        # BatchNorm (training-mode batch stats, single pass) + ReLU, all f32.
        mu = jnp.mean(y, axis=0, keepdims=True)
        var = jnp.maximum(jnp.mean(y * y, axis=0, keepdims=True) - mu * mu, 0.0)
        yn = (y - mu) * jax.lax.rsqrt(var + 1e-5) * gamma_ref[0] + beta_ref[0]
        x_st[...] = jnp.maximum(yn, 0.0)

    @pl.when(jnp.logical_and(k == k_last, l == l_last))
    def _():
        out_ref[...] = x_st[...]


def pna_stack_pallas(x0, dst_idx, src_oh, dst_oh, eattr,
                     inv_deg, amp, att, has, kp, *, tile_e, n_edges):
    N, Fp = x0.shape
    E_pad = src_oh.shape[0]
    Fep = eattr.shape[1]
    L = kp["wpre_i"].shape[0]
    n_kt = E_pad // tile_e
    grid = (L, n_kt)

    # index_maps receive the scalar-prefetch ref as a trailing positional arg
    def whole(shape):
        n = len(shape)
        return pl.BlockSpec(shape, lambda l, k, d, n=n: (0,) * n)

    def per_edge(tail):
        n = len(tail)
        return pl.BlockSpec((tile_e,) + tail,
                            lambda l, k, d, n=n: (k,) + (0,) * n)

    def per_layer(tail):
        n = len(tail)
        return pl.BlockSpec((1,) + tail,
                            lambda l, k, d, n=n: (l,) + (0,) * n)

    in_specs = [
        whole((N, Fp)),                # x0
        per_edge((N,)),                # src one-hot
        per_edge((N,)),                # dst one-hot
        per_edge((Fep,)),              # edge_attr (padded)
        whole((N, 1)),                 # 1 / clamp(deg, 1)
        whole((N, 1)),                 # amplification scaler
        whole((N, 1)),                 # attenuation scaler
        whole((N, 1)),                 # has-neighbour mask
        per_layer((Fp, Fp)),           # wpre_i
        per_layer((Fp, Fp)),           # wpre_j
        per_layer((Fep, Fp)),          # edge encoder folded into pre_nn
        per_layer((1, Fp)),            # folded edge/pre bias
        per_layer((Fp, Fp)),           # wpost (x block)
        per_layer((5 * Fp, 3 * Fp)),   # wpost (fused 5-aggregator block)
        per_layer((1, Fp)),            # bpost
        per_layer((Fp, Fp)),           # wlin
        per_layer((1, Fp)),            # blin
        per_layer((1, Fp)),            # gamma
        per_layer((1, Fp)),            # beta
    ]
    out_spec = pl.BlockSpec((N, Fp), lambda l, k, d: (0, 0))
    scratch = [
        pltpu.VMEM((N, Fp), jnp.float32),        # resident node state x
        pltpu.VMEM((2, N, Fp), jnp.bfloat16),    # x @ Wpre_i, x @ Wpre_j (bf16)
        pltpu.VMEM((N, Fp), jnp.float32),        # scatter sum
        pltpu.VMEM((N, Fp), jnp.float32),        # scatter sum-of-squares (f32)
        pltpu.VMEM((N, Fp), jnp.float32),        # running min
        pltpu.VMEM((N, Fp), jnp.float32),        # running max
        pltpu.VMEM((tile_e, Fp), jnp.float32),   # per-chunk messages
        pltpu.VMEM((N, 5 * Fp), jnp.bfloat16),   # fused aggregation operand
    ]
    kernel = functools.partial(pna_stack_kernel, n_edges=n_edges)
    return pl.pallas_call(
        kernel,
        out_shape=jax.ShapeDtypeStruct((N, Fp), jnp.float32),
        grid_spec=pltpu.PrefetchScalarGridSpec(
            num_scalar_prefetch=1, grid=grid,
            in_specs=in_specs, out_specs=out_spec, scratch_shapes=scratch),
        compiler_params=pltpu.CompilerParams(
            dimension_semantics=("arbitrary", "arbitrary"),
            vmem_limit_bytes=_vmem_limit_bytes()),
    )(dst_idx, x0, src_oh, dst_oh, eattr, inv_deg, amp, att, has,
      kp["wpre_i"], kp["wpre_j"], kp["we_fold"], kp["b_fold"],
      kp["wpost_x"], kp["wagg"], kp["bpost"],
      kp["wlin"], kp["blin"], kp["gamma"], kp["beta"])


# ----------------------------------------------------------------------------
# Pure-JAX reference mirroring the kernel's bf16-operand / f32-accum arithmetic
# ----------------------------------------------------------------------------
def pna_stack_ref(x, src, dst, edge_attr, params, inv_deg, amp, att, has):
    f32, bf = jnp.float32, jnp.bfloat16

    def bdot(a, b):
        return jnp.dot(a.astype(bf), b.astype(bf), preferred_element_type=f32)

    def rt(a):  # bf16 round-trip (mirrors MXU bf16 operand cast)
        return a.astype(bf).astype(f32)

    N, F = x.shape
    for p in params:
        xw_i = bdot(x, p["wpre_i"])
        xw_j = bdot(x, p["wpre_j"])
        m = (rt(xw_i)[dst] + rt(xw_j)[src]
             + bdot(edge_attr, p["we_fold"]) + p["b_fold"])
        s_sum = jnp.zeros((N, F), f32).at[dst].add(rt(m))
        s_msq = jnp.zeros((N, F), f32).at[dst].add(m * m) * inv_deg   # f32 m^2
        s_mean = s_sum * inv_deg
        s_std = jnp.sqrt(jnp.maximum(s_msq - s_mean * s_mean, 0.0) + 1e-5)
        s_min = jnp.where(has > 0.5, jnp.full((N, F), jnp.inf).at[dst].min(m), 0.0)
        s_max = jnp.where(has > 0.5, jnp.full((N, F), -jnp.inf).at[dst].max(m), 0.0)
        aggs = [s_mean, s_min, s_max, s_std, s_sum]
        r_id = sum(bdot(aggs[a], p["wagg"][a, 0]) for a in range(5))
        r_amp = sum(bdot(aggs[a], p["wagg"][a, 1]) for a in range(5))
        r_att = sum(bdot(aggs[a], p["wagg"][a, 2]) for a in range(5))
        post = bdot(x, p["wpost_x"]) + r_id + amp * r_amp + att * r_att + p["bpost"]
        y = bdot(post, p["wlin"]) + p["blin"]
        mu = jnp.mean(y, axis=0, keepdims=True)
        var = jnp.maximum(jnp.mean(y * y, axis=0, keepdims=True) - mu * mu, 0.0)
        yn = (y - mu) * jax.lax.rsqrt(var + 1e-5) * p["gamma"] + p["beta"]
        x = jnp.maximum(yn, 0.0)
    return x


# ----------------------------------------------------------------------------
# Parameter init (mirrors the PyTorch module's Linear/BatchNorm shapes) + the
# host-side split/fold into the kernel's layout.
# ----------------------------------------------------------------------------
def init_layer_params(key, F, Fe):
    ks = jax.random.split(key, 4)

    def lin_init(k, fan_in, fan_out):
        k1, k2 = jax.random.split(k)
        bound = 1.0 / np.sqrt(fan_in)
        w = jax.random.uniform(k1, (fan_in, fan_out), jnp.float32, -bound, bound)
        b = jax.random.uniform(k2, (1, fan_out), jnp.float32, -bound, bound)
        return w, b

    we, be = lin_init(ks[0], Fe, F)            # edge_encoder: Linear(Fe, F)
    wpre, bpre = lin_init(ks[1], 3 * F, F)     # pre_nn:       Linear(3F, F)
    wpost, bpost = lin_init(ks[2], 16 * F, F)  # post_nn:      Linear(16F, F)
    wlin, blin = lin_init(ks[3], F, F)         # self.lin:     Linear(F, F)

    # split pre_nn rows: [x_i | x_j | edge]
    wpre_i, wpre_j, wpre_e = wpre[0:F], wpre[F:2 * F], wpre[2 * F:3 * F]
    # fold the (bias-only) edge encoder into the pre_nn edge block (exact algebra)
    we_fold = jnp.dot(we, wpre_e, precision="highest")          # [Fe, F]
    b_fold = jnp.dot(be, wpre_e, precision="highest") + bpre    # [1, F]

    # split post_nn rows: [x | 3 scalers x 5 aggregators] -> wagg[agg, scaler]
    wpost_x = wpost[0:F]
    wagg = jnp.stack([
        jnp.stack([wpost[F + s * 5 * F + a * F: F + s * 5 * F + (a + 1) * F]
                   for s in range(3)])
        for a in range(5)])                                     # [5, 3, F, F]

    return dict(wpre_i=wpre_i, wpre_j=wpre_j, we_fold=we_fold, b_fold=b_fold,
                wpost_x=wpost_x, wagg=wagg, bpost=bpost, wlin=wlin, blin=blin,
                gamma=jnp.ones((1, F), jnp.float32),
                beta=jnp.zeros((1, F), jnp.float32))


def build_kernel_params(params, Fp, Fep):
    bf = jnp.bfloat16

    def padw(a, r, c):
        return jnp.pad(a, ((0, r - a.shape[0]), (0, c - a.shape[1])))

    def stack(fn):
        return jnp.stack([fn(p) for p in params])

    def wagg_cat(p):
        # row-concatenate per-aggregator [Fp, 3*Fp] blocks -> [5*Fp, 3*Fp]
        blocks = [jnp.concatenate([padw(p["wagg"][a, s], Fp, Fp)
                                   for s in range(3)], axis=1)
                  for a in range(5)]
        return jnp.concatenate(blocks, axis=0)

    return dict(
        wpre_i=stack(lambda p: padw(p["wpre_i"], Fp, Fp)).astype(bf),
        wpre_j=stack(lambda p: padw(p["wpre_j"], Fp, Fp)).astype(bf),
        we_fold=stack(lambda p: padw(p["we_fold"], Fep, Fp)).astype(bf),
        b_fold=stack(lambda p: padw(p["b_fold"], 1, Fp)),
        wpost_x=stack(lambda p: padw(p["wpost_x"], Fp, Fp)).astype(bf),
        wagg=stack(wagg_cat).astype(bf),
        bpost=stack(lambda p: padw(p["bpost"], 1, Fp)),
        wlin=stack(lambda p: padw(p["wlin"], Fp, Fp)).astype(bf),
        blin=stack(lambda p: padw(p["blin"], 1, Fp)),
        gamma=stack(lambda p: padw(p["gamma"], 1, Fp)),
        beta=stack(lambda p: padw(p["beta"], 1, Fp)),
    )


if __name__ == "__main__":
    N, F, E, Fe, LAYERS = 8, 32, 24, 8, 2      # nodes, node feats, edges, edge feats
    FP, FEP = 128, 128                         # lane-padded feature widths
    TILE_E = 16                                # edge-chunk (multiple of 16; use >=128 in prod)

    key = jax.random.PRNGKey(0)
    kx, ke, kp = jax.random.split(key, 3)
    x = jax.random.normal(kx, (N, F), jnp.float32)
    edge_attr = jax.random.normal(ke, (E, Fe), jnp.float32)

    # deterministic small graph: ring (every node has >=1 incoming edge) plus
    # deterministic extra edges; last chunk is partially padded.
    src = np.zeros(E, np.int32)
    dst = np.zeros(E, np.int32)
    src[:N] = np.arange(N)
    dst[:N] = (np.arange(N) + 1) % N
    extra = np.arange(E - N)
    src[N:] = (2 * extra) % N
    dst[N:] = (3 * extra + 5) % N

    # PNA 'dataset_indegree' histogram -> avg log-degree for the scalers
    indeg = np.bincount(dst, minlength=N)
    hist = np.bincount(indeg)
    avg_log = float((np.log(np.arange(len(hist)) + 1.0) * hist).sum() / hist.sum())

    params = [init_layer_params(k, F, Fe) for k in jax.random.split(kp, LAYERS)]

    # graph-static per-node scalars (shared by kernel and reference)
    deg = jnp.asarray(indeg, jnp.float32)[:, None]
    deg_c = jnp.maximum(deg, 1.0)
    inv_deg = 1.0 / deg_c
    log_deg = jnp.log(deg_c + 1.0)
    amp = log_deg / avg_log
    att = avg_log / log_deg
    has = (deg > 0.0).astype(jnp.float32)

    # padded, kernel-facing graph tensors
    E_pad = -(-E // TILE_E) * TILE_E
    src_oh = np.zeros((E_pad, N), np.float32); src_oh[np.arange(E), src] = 1.0
    dst_oh = np.zeros((E_pad, N), np.float32); dst_oh[np.arange(E), dst] = 1.0
    ea_pad = np.zeros((E_pad, FEP), np.float32); ea_pad[:E, :Fe] = np.asarray(edge_attr)
    dst_idx = np.zeros((E_pad,), np.int32); dst_idx[:E] = dst
    x_pad = jnp.zeros((N, FP), jnp.float32).at[:, :F].set(x)

    kparams = build_kernel_params(params, FP, FEP)

    # ---- Pallas forward: one fused kernel for the whole layer stack ----
    out_pad = pna_stack_pallas(
        x_pad,
        jnp.asarray(dst_idx, jnp.int32),
        jnp.asarray(src_oh, jnp.bfloat16),
        jnp.asarray(dst_oh, jnp.bfloat16),
        jnp.asarray(ea_pad, jnp.bfloat16),
        inv_deg, amp, att, has, kparams, tile_e=TILE_E, n_edges=E)
    out = np.asarray(jax.block_until_ready(out_pad))[:, :F]

    # ---- reference check ----
    ref = pna_stack_ref(x, jnp.asarray(src), jnp.asarray(dst), edge_attr,
                        params, inv_deg, amp, att, has)
    ref = np.asarray(jax.block_until_ready(ref))

    assert out.shape == (N, F)
    assert np.allclose(out, ref, rtol=2e-3, atol=2e-3), (
        "Pallas output mismatch vs JAX reference")
    print("KERNEL_OK")
</pallas_src>

<mosaic_0001>
module attributes {stable_mosaic.version = 11 : i64} {
  func.func @pna_stack_kernel(%arg0: i32, %arg1: i32, %arg2: memref<32xi32, #tpu.memory_space<smem>>, %arg3: memref<8x128xf32, #tpu.memory_space<vmem>>, %arg4: memref<16x8xbf16, #tpu.memory_space<vmem>>, %arg5: memref<16x8xbf16, #tpu.memory_space<vmem>>, %arg6: memref<16x128xbf16, #tpu.memory_space<vmem>>, %arg7: memref<8x1xf32, #tpu.memory_space<vmem>>, %arg8: memref<8x1xf32, #tpu.memory_space<vmem>>, %arg9: memref<8x1xf32, #tpu.memory_space<vmem>>, %arg10: memref<8x1xf32, #tpu.memory_space<vmem>>, %arg11: memref<1x128x128xbf16, #tpu.memory_space<vmem>>, %arg12: memref<1x128x128xbf16, #tpu.memory_space<vmem>>, %arg13: memref<1x128x128xbf16, #tpu.memory_space<vmem>>, %arg14: memref<1x1x128xf32, #tpu.memory_space<vmem>>, %arg15: memref<1x128x128xbf16, #tpu.memory_space<vmem>>, %arg16: memref<1x640x384xbf16, #tpu.memory_space<vmem>>, %arg17: memref<1x1x128xf32, #tpu.memory_space<vmem>>, %arg18: memref<1x128x128xbf16, #tpu.memory_space<vmem>>, %arg19: memref<1x1x128xf32, #tpu.memory_space<vmem>>, %arg20: memref<1x1x128xf32, #tpu.memory_space<vmem>>, %arg21: memref<1x1x128xf32, #tpu.memory_space<vmem>>, %arg22: memref<8x128xf32, #tpu.memory_space<vmem>>, %arg23: memref<8x128xf32, #tpu.memory_space<vmem>>, %arg24: memref<2x8x128xbf16, #tpu.memory_space<vmem>>, %arg25: memref<8x128xf32, #tpu.memory_space<vmem>>, %arg26: memref<8x128xf32, #tpu.memory_space<vmem>>, %arg27: memref<8x128xf32, #tpu.memory_space<vmem>>, %arg28: memref<8x128xf32, #tpu.memory_space<vmem>>, %arg29: memref<16x128xf32, #tpu.memory_space<vmem>>, %arg30: memref<8x640xbf16, #tpu.memory_space<vmem>>) attributes {dimension_semantics = [#tpu.dimension_semantics<arbitrary>, #tpu.dimension_semantics<arbitrary>], iteration_bounds = array<i64: 2, 2>, scalar_prefetch = 1 : i64, scratch_operands = 8 : i64, tpu.core_type = #tpu.core_type<tc>, window_params = [{pipeline_mode = #tpu.pipeline_mode<synchronous>, transform_indices = @transform_0, window_bounds = array<i64: 8, 128>}, {transform_indices = @transform_1, window_bounds = array<i64: 16, 8>}, {transform_indices = @transform_2, window_bounds = array<i64: 16, 8>}, {transform_indices = @transform_3, window_bounds = array<i64: 16, 128>}, {pipeline_mode = #tpu.pipeline_mode<synchronous>, transform_indices = @transform_4, window_bounds = array<i64: 8, 1>}, {pipeline_mode = #tpu.pipeline_mode<synchronous>, transform_indices = @transform_5, window_bounds = array<i64: 8, 1>}, {pipeline_mode = #tpu.pipeline_mode<synchronous>, transform_indices = @transform_6, window_bounds = array<i64: 8, 1>}, {pipeline_mode = #tpu.pipeline_mode<synchronous>, transform_indices = @transform_7, window_bounds = array<i64: 8, 1>}, {transform_indices = @transform_8, window_bounds = array<i64: 1, 128, 128>}, {transform_indices = @transform_9, window_bounds = array<i64: 1, 128, 128>}, {transform_indices = @transform_10, window_bounds = array<i64: 1, 128, 128>}, {transform_indices = @transform_11, window_bounds = array<i64: 1, 1, 128>}, {transform_indices = @transform_12, window_bounds = array<i64: 1, 128, 128>}, {transform_indices = @transform_13, window_bounds = array<i64: 1, 640, 384>}, {transform_indices = @transform_14, window_bounds = array<i64: 1, 1, 128>}, {transform_indices = @transform_15, window_bounds = array<i64: 1, 128, 128>}, {transform_indices = @transform_16, window_bounds = array<i64: 1, 1, 128>}, {transform_indices = @transform_17, window_bounds = array<i64: 1, 1, 128>}, {transform_indices = @transform_18, window_bounds = array<i64: 1, 1, 128>}, {pipeline_mode = #tpu.pipeline_mode<synchronous>, transform_indices = @transform_19, window_bounds = array<i64: 8, 128>}]} {
    %c0_i32 = arith.constant 0 : i32
    %0 = arith.cmpi eq, %arg0, %c0_i32 : i32
    %c0_i32_0 = arith.constant 0 : i32
    %1 = arith.cmpi eq, %arg1, %c0_i32_0 : i32
    %2 = arith.andi %0, %1 : i1
    %3 = arith.extui %2 : i1 to i32
    %c0_i32_1 = arith.constant 0 : i32
    %4 = arith.cmpi ne, %3, %c0_i32_1 : i32
    scf.if %4 {
      %c0_38 = arith.constant 0 : index
      %c0_39 = arith.constant 0 : index
      %42 = vector.load %arg3[%c0_38, %c0_39] : memref<8x128xf32, #tpu.memory_space<vmem>>, vector<8x128xf32>
      %c0_40 = arith.constant 0 : index
      %c0_41 = arith.constant 0 : index
      %43 = vector.load %arg23[%c0_40, %c0_41] : memref<8x128xf32, #tpu.memory_space<vmem>>, vector<8x128xf32>
      tpu.vector_store %arg23[%c0_40, %c0_41], %42 {strides = array<i32>} : memref<8x128xf32, #tpu.memory_space<vmem>>, vector<8x128xf32>,
    } else {
    }
    %c0_i32_2 = arith.constant 0 : i32
    %5 = arith.cmpi eq, %arg1, %c0_i32_2 : i32
    %6 = arith.extui %5 : i1 to i32
    %cst = arith.constant 1.000000e+30 : f32
    %c0_i32_3 = arith.constant 0 : i32
    %7 = arith.cmpi ne, %6, %c0_i32_3 : i32
    scf.if %7 {
      %c0_38 = arith.constant 0 : index
      %c0_39 = arith.constant 0 : index
      %42 = vector.load %arg23[%c0_38, %c0_39] : memref<8x128xf32, #tpu.memory_space<vmem>>, vector<8x128xf32>
      %c0_40 = arith.constant 0 : index
      %c0_41 = arith.constant 0 : index
      %c0_42 = arith.constant 0 : index
      %43 = vector.load %arg11[%c0_40, %c0_41, %c0_42] : memref<1x128x128xbf16, #tpu.memory_space<vmem>>, vector<1x128x128xbf16>
      %44 = vector.shape_cast %43 : vector<1x128x128xbf16> to vector<128x128xbf16>
      %45 = arith.truncf %42 : vector<8x128xf32> to vector<8x128xbf16>
      %cst_43 = arith.constant dense<0.000000e+00> : vector<8x128xf32>
      %46 = tpu.matmul %45, %44, %cst_43 {dimension_numbers = #tpu.dot_dimension_numbers<[1], [0], [0], [1], [0, 0, 1, 1], [], []>} : vector<8x128xbf16>, vector<128x128xbf16>, vector<8x128xf32> -> vector<8x128xf32>
      %47 = arith.truncf %46 : vector<8x128xf32> to vector<8x128xbf16>
      %c0_44 = arith.constant 0 : index
      %c0_45 = arith.constant 0 : index
      %c0_46 = arith.constant 0 : index
      %48 = vector.load %arg24[%c0_44, %c0_45, %c0_46] : memref<2x8x128xbf16, #tpu.memory_space<vmem>>, vector<1x8x128xbf16>
      %49 = vector.shape_cast %48 : vector<1x8x128xbf16> to vector<8x128xbf16>
      %50 = vector.shape_cast %47 : vector<8x128xbf16> to vector<1x8x128xbf16>
      tpu.vector_store %arg24[%c0_44, %c0_45, %c0_46], %50 {strides = array<i32>} : memref<2x8x128xbf16, #tpu.memory_space<vmem>>, vector<1x8x128xbf16>,
      %c0_47 = arith.constant 0 : index
      %c0_48 = arith.constant 0 : index
      %c0_49 = arith.constant 0 : index
      %51 = vector.load %arg12[%c0_47, %c0_48, %c0_49] : memref<1x128x128xbf16, #tpu.memory_space<vmem>>, vector<1x128x128xbf16>
      %52 = vector.shape_cast %51 : vector<1x128x128xbf16> to vector<128x128xbf16>
      %53 = arith.truncf %42 : vector<8x128xf32> to vector<8x128xbf16>
      %cst_50 = arith.constant dense<0.000000e+00> : vector<8x128xf32>
      %54 = tpu.matmul %53, %52, %cst_50 {dimension_numbers = #tpu.dot_dimension_numbers<[1], [0], [0], [1], [0, 0, 1, 1], [], []>} : vector<8x128xbf16>, vector<128x128xbf16>, vector<8x128xf32> -> vector<8x128xf32>
      %55 = arith.truncf %54 : vector<8x128xf32> to vector<8x128xbf16>
      %c1_51 = arith.constant 1 : index
      %c0_52 = arith.constant 0 : index
      %c0_53 = arith.constant 0 : index
      %56 = vector.load %arg24[%c1_51, %c0_52, %c0_53] : memref<2x8x128xbf16, #tpu.memory_space<vmem>>, vector<1x8x128xbf16>
      %57 = vector.shape_cast %56 : vector<1x8x128xbf16> to vector<8x128xbf16>
      %58 = vector.shape_cast %55 : vector<8x128xbf16> to vector<1x8x128xbf16>
      tpu.vector_store %arg24[%c1_51, %c0_52, %c0_53], %58 {strides = array<i32>} : memref<2x8x128xbf16, #tpu.memory_space<vmem>>, vector<1x8x128xbf16>,
      %cst_54 = arith.constant 0.000000e+00 : f32
      %59 = vector.broadcast %cst_54 : f32 to vector<8x128xf32>
      %c0_55 = arith.constant 0 : index
      %c0_56 = arith.constant 0 : index
      %60 = vector.load %arg25[%c0_55, %c0_56] : memref<8x128xf32, #tpu.memory_space<vmem>>, vector<8x128xf32>
      tpu.vector_store %arg25[%c0_55, %c0_56], %59 {strides = array<i32>} : memref<8x128xf32, #tpu.memory_space<vmem>>, vector<8x128xf32>,
      %cst_57 = arith.constant 0.000000e+00 : f32
      %61 = vector.broadcast %cst_57 : f32 to vector<8x128xf32>
      %c0_58 = arith.constant 0 : index
      %c0_59 = arith.constant 0 : index
      %62 = vector.load %arg26[%c0_58, %c0_59] : memref<8x128xf32, #tpu.memory_space<vmem>>, vector<8x128xf32>
      tpu.vector_store %arg26[%c0_58, %c0_59], %61 {strides = array<i32>} : memref<8x128xf32, #tpu.memory_space<vmem>>, vector<8x128xf32>,
      %63 = vector.broadcast %cst : f32 to vector<8x128xf32>
      %c0_60 = arith.constant 0 : index
      %c0_61 = arith.constant 0 : index
      %64 = vector.load %arg27[%c0_60, %c0_61] : memref<8x128xf32, #tpu.memory_space<vmem>>, vector<8x128xf32>
      tpu.vector_store %arg27[%c0_60, %c0_61], %63 {strides = array<i32>} : memref<8x128xf32, #tpu.memory_space<vmem>>, vector<8x128xf32>,
      %cst_62 = arith.constant 0.000000e+00 : f32
      %65 = arith.subf %cst_62, %cst : f32
      %66 = vector.broadcast %65 : f32 to vector<8x128xf32>
      %c0_63 = arith.constant 0 : index
      %c0_64 = arith.constant 0 : index
      %67 = vector.load %arg28[%c0_63, %c0_64] : memref<8x128xf32, #tpu.memory_space<vmem>>, vector<8x128xf32>
      tpu.vector_store %arg28[%c0_63, %c0_64], %66 {strides = array<i32>} : memref<8x128xf32, #tpu.memory_space<vmem>>, vector<8x128xf32>,
    } else {
    }
    %c0 = arith.constant 0 : index
    %c0_4 = arith.constant 0 : index
    %8 = vector.load %arg4[%c0, %c0_4] : memref<16x8xbf16, #tpu.memory_space<vmem>>, vector<16x8xbf16>
    %c0_5 = arith.constant 0 : index
    %c0_6 = arith.constant 0 : index
    %9 = vector.load %arg5[%c0_5, %c0_6] : memref<16x8xbf16, #tpu.memory_space<vmem>>, vector<16x8xbf16>
    %c0_7 = arith.constant 0 : index
    %c0_8 = arith.constant 0 : index
    %c0_9 = arith.constant 0 : index
    %10 = vector.load %arg24[%c0_7, %c0_8, %c0_9] : memref<2x8x128xbf16, #tpu.memory_space<vmem>>, vector<1x8x128xbf16>
    %11 = vector.shape_cast %10 : vector<1x8x128xbf16> to vector<8x128xbf16>
    %cst_10 = arith.constant dense<0.000000e+00> : vector<16x128xf32>
    %12 = tpu.matmul %9, %11, %cst_10 {dimension_numbers = #tpu.dot_dimension_numbers<[1], [0], [0], [1], [0, 0, 1, 1], [], []>} : vector<16x8xbf16>, vector<8x128xbf16>, vector<16x128xf32> -> vector<16x128xf32>
    %c1 = arith.constant 1 : index
    %c0_11 = arith.constant 0 : index
    %c0_12 = arith.constant 0 : index
    %13 = vector.load %arg24[%c1, %c0_11, %c0_12] : memref<2x8x128xbf16, #tpu.memory_space<vmem>>, vector<1x8x128xbf16>
    %14 = vector.shape_cast %13 : vector<1x8x128xbf16> to vector<8x128xbf16>
    %cst_13 = arith.constant dense<0.000000e+00> : vector<16x128xf32>
    %15 = tpu.matmul %8, %14, %cst_13 {dimension_numbers = #tpu.dot_dimension_numbers<[1], [0], [0], [1], [0, 0, 1, 1], [], []>} : vector<16x8xbf16>, vector<8x128xbf16>, vector<16x128xf32> -> vector<16x128xf32>
    %16 = arith.addf %12, %15 : vector<16x128xf32>
    %c0_14 = arith.constant 0 : index
    %c0_15 = arith.constant 0 : index
    %17 = vector.load %arg6[%c0_14, %c0_15] : memref<16x128xbf16, #tpu.memory_space<vmem>>, vector<16x128xbf16>
    %c0_16 = arith.constant 0 : index
    %c0_17 = arith.constant 0 : index
    %c0_18 = arith.constant 0 : index
    %18 = vector.load %arg13[%c0_16, %c0_17, %c0_18] : memref<1x128x128xbf16, #tpu.memory_space<vmem>>, vector<1x128x128xbf16>
    %19 = vector.shape_cast %18 : vector<1x128x128xbf16> to vector<128x128xbf16>
    %cst_19 = arith.constant dense<0.000000e+00> : vector<16x128xf32>
    %20 = tpu.matmul %17, %19, %cst_19 {dimension_numbers = #tpu.dot_dimension_numbers<[1], [0], [0], [1], [0, 0, 1, 1], [], []>} : vector<16x128xbf16>, vector<128x128xbf16>, vector<16x128xf32> -> vector<16x128xf32>
    %21 = arith.addf %16, %20 : vector<16x128xf32>
    %c0_20 = arith.constant 0 : index
    %c0_21 = arith.constant 0 : index
    %c0_22 = arith.constant 0 : index
    %22 = vector.load %arg14[%c0_20, %c0_21, %c0_22] : memref<1x1x128xf32, #tpu.memory_space<vmem>>, vector<1x1x128xf32>
    %23 = vector.shape_cast %22 : vector<1x1x128xf32> to vector<1x128xf32>
    %24 = vector.broadcast %23 : vector<1x128xf32> to vector<16x128xf32>
    %25 = arith.addf %21, %24 : vector<16x128xf32>
    %c0_23 = arith.constant 0 : index
    %c0_24 = arith.constant 0 : index
    %26 = vector.load %arg25[%c0_23, %c0_24] : memref<8x128xf32, #tpu.memory_space<vmem>>, vector<8x128xf32>
    %27 = arith.truncf %25 : vector<16x128xf32> to vector<16x128xbf16>
    %cst_25 = arith.constant dense<0.000000e+00> : vector<8x128xf32>
    %28 = tpu.matmul %9, %27, %cst_25 {dimension_numbers = #tpu.dot_dimension_numbers<[0], [0], [1], [1], [0, 1, 1, 1], [], []>} : vector<16x8xbf16>, vector<16x128xbf16>, vector<8x128xf32> -> vector<8x128xf32>
    %29 = arith.addf %26, %28 : vector<8x128xf32>
    %c0_26 = arith.constant 0 : index
    %c0_27 = arith.constant 0 : index
    %30 = vector.load %arg25[%c0_26, %c0_27] : memref<8x128xf32, #tpu.memory_space<vmem>>, vector<8x128xf32>
    tpu.vector_store %arg25[%c0_26, %c0_27], %29 {strides = array<i32>} : memref<8x128xf32, #tpu.memory_space<vmem>>, vector<8x128xf32>,
    %c0_28 = arith.constant 0 : index
    %c0_29 = arith.constant 0 : index
    %31 = vector.load %arg29[%c0_28, %c0_29] : memref<16x128xf32, #tpu.memory_space<vmem>>, vector<16x128xf32>
    tpu.vector_store %arg29[%c0_28, %c0_29], %25 {strides = array<i32>} : memref<16x128xf32, #tpu.memory_space<vmem>>, vector<16x128xf32>,
    %c16_i32 = arith.constant 16 : i32
    %32 = arith.muli %arg1, %c16_i32 : i32
    %c0_i32_30 = arith.constant 0 : i32
    %c16_i32_31 = arith.constant 16 : i32
    %33 = arith.addi %c0_i32_30, %c16_i32_31 : i32
    %c1_i32 = arith.constant 1 : i32
    scf.for %arg31 = %c0_i32_30 to %33 step %c1_i32  : i32 {
      %42 = arith.addi %32, %arg31 : i32
      %c24_i32 = arith.constant 24 : i32
      %43 = arith.cmpi slt, %42, %c24_i32 : i32
      %44 = arith.extui %43 : i1 to i32
      %c0_i32_38 = arith.constant 0 : i32
      %45 = arith.cmpi ne, %44, %c0_i32_38 : i32
      scf.if %45 {
        %46 = arith.addi %32, %arg31 : i32
        %47 = arith.index_cast %46 : i32 to index
        %48 = memref.load %arg2[%47] : memref<32xi32, #tpu.memory_space<smem>>
        %49 = arith.index_cast %arg31 : i32 to index
        %c0_39 = arith.constant 0 : index
        %50 = vector.load %arg29[%49, %c0_39] : memref<16x128xf32, #tpu.memory_space<vmem>>, vector<1x128xf32>
        %51 = arith.index_cast %48 : i32 to index
        %c0_40 = arith.constant 0 : index
        %52 = vector.load %arg26[%51, %c0_40] : memref<8x128xf32, #tpu.memory_space<vmem>>, vector<1x128xf32>
        %53 = arith.mulf %50, %50 : vector<1x128xf32>
        %54 = arith.addf %52, %53 : vector<1x128xf32>
        %55 = arith.index_cast %48 : i32 to index
        %c0_41 = arith.constant 0 : index
        %56 = vector.load %arg26[%55, %c0_41] : memref<8x128xf32, #tpu.memory_space<vmem>>, vector<1x128xf32>
        tpu.vector_store %arg26[%55, %c0_41], %54 {strides = array<i32>} : memref<8x128xf32, #tpu.memory_space<vmem>>, vector<1x128xf32>,
        %57 = arith.index_cast %48 : i32 to index
        %c0_42 = arith.constant 0 : index
        %58 = vector.load %arg27[%57, %c0_42] : memref<8x128xf32, #tpu.memory_space<vmem>>, vector<1x128xf32>
        %59 = arith.minimumf %58, %50 : vector<1x128xf32>
        %60 = arith.index_cast %48 : i32 to index
        %c0_43 = arith.constant 0 : index
        %61 = vector.load %arg27[%60, %c0_43] : memref<8x128xf32, #tpu.memory_space<vmem>>, vector<1x128xf32>
        tpu.vector_store %arg27[%60, %c0_43], %59 {strides = array<i32>} : memref<8x128xf32, #tpu.memory_space<vmem>>, vector<1x128xf32>,
        %62 = arith.index_cast %48 : i32 to index
        %c0_44 = arith.constant 0 : index
        %63 = vector.load %arg28[%62, %c0_44] : memref<8x128xf32, #tpu.memory_space<vmem>>, vector<1x128xf32>
        %64 = arith.maximumf %63, %50 : vector<1x128xf32>
        %65 = arith.index_cast %48 : i32 to index
        %c0_45 = arith.constant 0 : index
        %66 = vector.load %arg28[%65, %c0_45] : memref<8x128xf32, #tpu.memory_space<vmem>>, vector<1x128xf32>
        tpu.vector_store %arg28[%65, %c0_45], %64 {strides = array<i32>} : memref<8x128xf32, #tpu.memory_space<vmem>>, vector<1x128xf32>,
      } else {
      }
    }
    %c16_i32_32 = arith.constant 16 : i32
    %c1_i32_33 = arith.constant 1 : i32
    %34 = arith.cmpi eq, %arg1, %c1_i32_33 : i32
    %35 = arith.extui %34 : i1 to i32
    %c0_i32_34 = arith.constant 0 : i32
    %36 = arith.cmpi ne, %35, %c0_i32_34 : i32
    scf.if %36 {
      %c0_38 = arith.constant 0 : index
      %c0_39 = arith.constant 0 : index
      %42 = vector.load %arg7[%c0_38, %c0_39] : memref<8x1xf32, #tpu.memory_space<vmem>>, vector<8x1xf32>
      %c0_40 = arith.constant 0 : index
      %c0_41 = arith.constant 0 : index
      %43 = vector.load %arg10[%c0_40, %c0_41] : memref<8x1xf32, #tpu.memory_space<vmem>>, vector<8x1xf32>
      %cst_42 = arith.constant 5.000000e-01 : f32
      %44 = vector.broadcast %cst_42 : f32 to vector<8x1xf32>
      %45 = arith.cmpf ogt, %43, %44 : vector<8x1xf32>
      %c0_43 = arith.constant 0 : index
      %c0_44 = arith.constant 0 : index
      %46 = vector.load %arg25[%c0_43, %c0_44] : memref<8x128xf32, #tpu.memory_space<vmem>>, vector<8x128xf32>
      %47 = vector.broadcast %42 : vector<8x1xf32> to vector<8x128xf32>
      %48 = arith.mulf %46, %47 : vector<8x128xf32>
      %c0_45 = arith.constant 0 : index
      %c0_46 = arith.constant 0 : index
      %49 = vector.load %arg26[%c0_45, %c0_46] : memref<8x128xf32, #tpu.memory_space<vmem>>, vector<8x128xf32>
      %50 = vector.broadcast %42 : vector<8x1xf32> to vector<8x128xf32>
      %51 = arith.mulf %49, %50 : vector<8x128xf32>
      %52 = arith.mulf %48, %48 : vector<8x128xf32>
      %53 = arith.subf %51, %52 : vector<8x128xf32>
      %cst_47 = arith.constant 0.000000e+00 : f32
      %54 = vector.broadcast %cst_47 : f32 to vector<8x128xf32>
      %55 = arith.maximumf %53, %54 : vector<8x128xf32>
      %cst_48 = arith.constant 9.99999974E-6 : f32
      %56 = vector.broadcast %cst_48 : f32 to vector<8x128xf32>
      %57 = arith.addf %55, %56 : vector<8x128xf32>
      %58 = math.sqrt %57 : vector<8x128xf32>
      %c0_49 = arith.constant 0 : index
      %c0_50 = arith.constant 0 : index
      %59 = vector.load %arg27[%c0_49, %c0_50] : memref<8x128xf32, #tpu.memory_space<vmem>>, vector<8x128xf32>
      %cst_51 = arith.constant 0.000000e+00 : f32
      %60 = vector.shape_cast %45 : vector<8x1xi1> to vector<8x1xi1>
      %61 = vector.broadcast %60 : vector<8x1xi1> to vector<8x128xi1>
      %62 = vector.broadcast %cst_51 : f32 to vector<8x128xf32>
      %63 = arith.select %61, %59, %62 : vector<8x128xi1>, vector<8x128xf32>
      %c0_52 = arith.constant 0 : index
      %c0_53 = arith.constant 0 : index
      %64 = vector.load %arg28[%c0_52, %c0_53] : memref<8x128xf32, #tpu.memory_space<vmem>>, vector<8x128xf32>
      %cst_54 = arith.constant 0.000000e+00 : f32
      %65 = vector.shape_cast %45 : vector<8x1xi1> to vector<8x1xi1>
      %66 = vector.broadcast %65 : vector<8x1xi1> to vector<8x128xi1>
      %67 = vector.broadcast %cst_54 : f32 to vector<8x128xf32>
      %68 = arith.select %66, %64, %67 : vector<8x128xi1>, vector<8x128xf32>
      %69 = arith.truncf %48 : vector<8x128xf32> to vector<8x128xbf16>
      %c0_55 = arith.constant 0 : index
      %c0_56 = arith.constant 0 : index
      %70 = vector.load %arg30[%c0_55, %c0_56] : memref<8x640xbf16, #tpu.memory_space<vmem>>, vector<8x128xbf16>
      tpu.vector_store %arg30[%c0_55, %c0_56], %69 {strides = array<i32>} : memref<8x640xbf16, #tpu.memory_space<vmem>>, vector<8x128xbf16>,
      %71 = arith.truncf %63 : vector<8x128xf32> to vector<8x128xbf16>
      %c0_57 = arith.constant 0 : index
      %c128 = arith.constant 128 : index
      %72 = vector.load %arg30[%c0_57, %c128] : memref<8x640xbf16, #tpu.memory_space<vmem>>, vector<8x128xbf16>
      tpu.vector_store %arg30[%c0_57, %c128], %71 {strides = array<i32>} : memref<8x640xbf16, #tpu.memory_space<vmem>>, vector<8x128xbf16>,
      %73 = arith.truncf %68 : vector<8x128xf32> to vector<8x128xbf16>
      %c0_58 = arith.constant 0 : index
      %c256 = arith.constant 256 : index
      %74 = vector.load %arg30[%c0_58, %c256] : memref<8x640xbf16, #tpu.memory_space<vmem>>, vector<8x128xbf16>
      tpu.vector_store %arg30[%c0_58, %c256], %73 {strides = array<i32>} : memref<8x640xbf16, #tpu.memory_space<vmem>>, vector<8x128xbf16>,
      %75 = arith.truncf %58 : vector<8x128xf32> to vector<8x128xbf16>
      %c0_59 = arith.constant 0 : index
      %c384 = arith.constant 384 : index
      %76 = vector.load %arg30[%c0_59, %c384] : memref<8x640xbf16, #tpu.memory_space<vmem>>, vector<8x128xbf16>
      tpu.vector_store %arg30[%c0_59, %c384], %75 {strides = array<i32>} : memref<8x640xbf16, #tpu.memory_space<vmem>>, vector<8x128xbf16>,
      %77 = arith.truncf %46 : vector<8x128xf32> to vector<8x128xbf16>
      %c0_60 = arith.constant 0 : index
      %c512 = arith.constant 512 : index
      %78 = vector.load %arg30[%c0_60, %c512] : memref<8x640xbf16, #tpu.memory_space<vmem>>, vector<8x128xbf16>
      tpu.vector_store %arg30[%c0_60, %c512], %77 {strides = array<i32>} : memref<8x640xbf16, #tpu.memory_space<vmem>>, vector<8x128xbf16>,
      %c0_61 = arith.constant 0 : index
      %c0_62 = arith.constant 0 : index
      %79 = vector.load %arg23[%c0_61, %c0_62] : memref<8x128xf32, #tpu.memory_space<vmem>>, vector<8x128xf32>
      %c0_63 = arith.constant 0 : index
      %c0_64 = arith.constant 0 : index
      %80 = vector.load %arg30[%c0_63, %c0_64] : memref<8x640xbf16, #tpu.memory_space<vmem>>, vector<8x640xbf16>
      %c0_65 = arith.constant 0 : index
      %c0_66 = arith.constant 0 : index
      %c0_67 = arith.constant 0 : index
      %81 = vector.load %arg16[%c0_65, %c0_66, %c0_67] : memref<1x640x384xbf16, #tpu.memory_space<vmem>>, vector<1x640x384xbf16>
      %82 = vector.shape_cast %81 : vector<1x640x384xbf16> to vector<640x384xbf16>
      %cst_68 = arith.constant dense<0.000000e+00> : vector<8x384xf32>
      %83 = tpu.matmul %80, %82, %cst_68 {dimension_numbers = #tpu.dot_dimension_numbers<[1], [0], [0], [1], [0, 0, 1, 1], [], []>} : vector<8x640xbf16>, vector<640x384xbf16>, vector<8x384xf32> -> vector<8x384xf32>
      %c0_69 = arith.constant 0 : index
      %c0_70 = arith.constant 0 : index
      %c0_71 = arith.constant 0 : index
      %84 = vector.load %arg15[%c0_69, %c0_70, %c0_71] : memref<1x128x128xbf16, #tpu.memory_space<vmem>>, vector<1x128x128xbf16>
      %85 = vector.shape_cast %84 : vector<1x128x128xbf16> to vector<128x128xbf16>
      %86 = arith.truncf %79 : vector<8x128xf32> to vector<8x128xbf16>
      %cst_72 = arith.constant dense<0.000000e+00> : vector<8x128xf32>
      %87 = tpu.matmul %86, %85, %cst_72 {dimension_numbers = #tpu.dot_dimension_numbers<[1], [0], [0], [1], [0, 0, 1, 1], [], []>} : vector<8x128xbf16>, vector<128x128xbf16>, vector<8x128xf32> -> vector<8x128xf32>
      %88 = vector.extract_strided_slice %83 {offsets = [0, 0], sizes = [8, 128], strides = [1, 1]} : vector<8x384xf32> to vector<8x128xf32>
      %89 = arith.addf %87, %88 : vector<8x128xf32>
      %c0_73 = arith.constant 0 : index
      %c0_74 = arith.constant 0 : index
      %90 = vector.load %arg8[%c0_73, %c0_74] : memref<8x1xf32, #tpu.memory_space<vmem>>, vector<8x1xf32>
      %91 = vector.extract_strided_slice %83 {offsets = [0, 128], sizes = [8, 128], strides = [1, 1]} : vector<8x384xf32> to vector<8x128xf32>
      %92 = vector.broadcast %90 : vector<8x1xf32> to vector<8x128xf32>
      %93 = arith.mulf %92, %91 : vector<8x128xf32>
      %94 = arith.addf %89, %93 : vector<8x128xf32>
      %c0_75 = arith.constant 0 : index
      %c0_76 = arith.constant 0 : index
      %95 = vector.load %arg9[%c0_75, %c0_76] : memref<8x1xf32, #tpu.memory_space<vmem>>, vector<8x1xf32>
      %96 = vector.extract_strided_slice %83 {offsets = [0, 256], sizes = [8, 128], strides = [1, 1]} : vector<8x384xf32> to vector<8x128xf32>
      %97 = vector.broadcast %95 : vector<8x1xf32> to vector<8x128xf32>
      %98 = arith.mulf %97, %96 : vector<8x128xf32>
      %99 = arith.addf %94, %98 : vector<8x128xf32>
      %c0_77 = arith.constant 0 : index
      %c0_78 = arith.constant 0 : index
      %c0_79 = arith.constant 0 : index
      %100 = vector.load %arg17[%c0_77, %c0_78, %c0_79] : memref<1x1x128xf32, #tpu.memory_space<vmem>>, vector<1x1x128xf32>
      %101 = vector.shape_cast %100 : vector<1x1x128xf32> to vector<1x128xf32>
      %102 = vector.broadcast %101 : vector<1x128xf32> to vector<8x128xf32>
      %103 = arith.addf %99, %102 : vector<8x128xf32>
      %c0_80 = arith.constant 0 : index
      %c0_81 = arith.constant 0 : index
      %c0_82 = arith.constant 0 : index
      %104 = vector.load %arg18[%c0_80, %c0_81, %c0_82] : memref<1x128x128xbf16, #tpu.memory_space<vmem>>, vector<1x128x128xbf16>
      %105 = vector.shape_cast %104 : vector<1x128x128xbf16> to vector<128x128xbf16>
      %106 = arith.truncf %103 : vector<8x128xf32> to vector<8x128xbf16>
      %cst_83 = arith.constant dense<0.000000e+00> : vector<8x128xf32>
      %107 = tpu.matmul %106, %105, %cst_83 {dimension_numbers = #tpu.dot_dimension_numbers<[1], [0], [0], [1], [0, 0, 1, 1], [], []>} : vector<8x128xbf16>, vector<128x128xbf16>, vector<8x128xf32> -> vector<8x128xf32>
      %c0_84 = arith.constant 0 : index
      %c0_85 = arith.constant 0 : index
      %c0_86 = arith.constant 0 : index
      %108 = vector.load %arg19[%c0_84, %c0_85, %c0_86] : memref<1x1x128xf32, #tpu.memory_space<vmem>>, vector<1x1x128xf32>
      %109 = vector.shape_cast %108 : vector<1x1x128xf32> to vector<1x128xf32>
      %110 = vector.broadcast %109 : vector<1x128xf32> to vector<8x128xf32>
      %111 = arith.addf %107, %110 : vector<8x128xf32>
      %cst_87 = arith.constant dense<0.000000e+00> : vector<128xf32>
      %112 = vector.multi_reduction <add>, %111, %cst_87 [0] : vector<8x128xf32> to vector<128xf32>
      %113 = vector.shape_cast %112 : vector<128xf32> to vector<1x128xf32>
      %cst_88 = arith.constant 8.000000e+00 : f32
      %114 = vector.broadcast %cst_88 : f32 to vector<1x128xf32>
      %115 = arith.divf %113, %114 : vector<1x128xf32>
      %116 = arith.mulf %111, %111 : vector<8x128xf32>
      %cst_89 = arith.constant dense<0.000000e+00> : vector<128xf32>
      %117 = vector.multi_reduction <add>, %116, %cst_89 [0] : vector<8x128xf32> to vector<128xf32>
      %118 = vector.shape_cast %117 : vector<128xf32> to vector<1x128xf32>
      %cst_90 = arith.constant 8.000000e+00 : f32
      %119 = vector.broadcast %cst_90 : f32 to vector<1x128xf32>
      %120 = arith.divf %118, %119 : vector<1x128xf32>
      %121 = arith.mulf %115, %115 : vector<1x128xf32>
      %122 = arith.subf %120, %121 : vector<1x128xf32>
      %cst_91 = arith.constant 0.000000e+00 : f32
      %123 = vector.broadcast %cst_91 : f32 to vector<1x128xf32>
      %124 = arith.maximumf %122, %123 : vector<1x128xf32>
      %125 = vector.broadcast %115 : vector<1x128xf32> to vector<8x128xf32>
      %126 = arith.subf %111, %125 : vector<8x128xf32>
      %cst_92 = arith.constant 9.99999974E-6 : f32
      %127 = vector.broadcast %cst_92 : f32 to vector<1x128xf32>
      %128 = arith.addf %124, %127 : vector<1x128xf32>
      %129 = math.rsqrt %128 : vector<1x128xf32>
      %130 = vector.broadcast %129 : vector<1x128xf32> to vector<8x128xf32>
      %131 = arith.mulf %126, %130 : vector<8x128xf32>
      %c0_93 = arith.constant 0 : index
      %c0_94 = arith.constant 0 : index
      %c0_95 = arith.constant 0 : index
      %132 = vector.load %arg20[%c0_93, %c0_94, %c0_95] : memref<1x1x128xf32, #tpu.memory_space<vmem>>, vector<1x1x128xf32>
      %133 = vector.shape_cast %132 : vector<1x1x128xf32> to vector<1x128xf32>
      %134 = vector.broadcast %133 : vector<1x128xf32> to vector<8x128xf32>
      %135 = arith.mulf %131, %134 : vector<8x128xf32>
      %c0_96 = arith.constant 0 : index
      %c0_97 = arith.constant 0 : index
      %c0_98 = arith.constant 0 : index
      %136 = vector.load %arg21[%c0_96, %c0_97, %c0_98] : memref<1x1x128xf32, #tpu.memory_space<vmem>>, vector<1x1x128xf32>
      %137 = vector.shape_cast %136 : vector<1x1x128xf32> to vector<1x128xf32>
      %138 = vector.broadcast %137 : vector<1x128xf32> to vector<8x128xf32>
      %139 = arith.addf %135, %138 : vector<8x128xf32>
      %cst_99 = arith.constant 0.000000e+00 : f32
      %140 = vector.broadcast %cst_99 : f32 to vector<8x128xf32>
      %141 = arith.maximumf %139, %140 : vector<8x128xf32>
      %c0_100 = arith.constant 0 : index
      %c0_101 = arith.constant 0 : index
      %142 = vector.load %arg23[%c0_100, %c0_101] : memref<8x128xf32, #tpu.memory_space<vmem>>, vector<8x128xf32>
      tpu.vector_store %arg23[%c0_100, %c0_101], %141 {strides = array<i32>} : memref<8x128xf32, #tpu.memory_space<vmem>>, vector<8x128xf32>,
    } else {
    }
    %c1_i32_35 = arith.constant 1 : i32
    %37 = arith.cmpi eq, %arg1, %c1_i32_35 : i32
    %c1_i32_36 = arith.constant 1 : i32
    %38 = arith.cmpi eq, %arg0, %c1_i32_36 : i32
    %39 = arith.andi %37, %38 : i1
    %40 = arith.extui %39 : i1 to i32
    %c0_i32_37 = arith.constant 0 : i32
    %41 = arith.cmpi ne, %40, %c0_i32_37 : i32
    scf.if %41 {
      %c0_38 = arith.constant 0 : index
      %c0_39 = arith.constant 0 : index
      %42 = vector.load %arg23[%c0_38, %c0_39] : memref<8x128xf32, #tpu.memory_space<vmem>>, vector<8x128xf32>
      %c0_40 = arith.constant 0 : index
      %c0_41 = arith.constant 0 : index
      %43 = vector.load %arg22[%c0_40, %c0_41] : memref<8x128xf32, #tpu.memory_space<vmem>>, vector<8x128xf32>
      tpu.vector_store %arg22[%c0_40, %c0_41], %42 {strides = array<i32>} : memref<8x128xf32, #tpu.memory_space<vmem>>, vector<8x128xf32>,
    } else {
    }
    return
  }
  func.func @transform_0(%arg0: i32, %arg1: i32, %arg2: memref<32xi32, #tpu.memory_space<smem>>) -> (i32, i32) {
    %c0_i32 = arith.constant 0 : i32
    %c0_i32_0 = arith.constant 0 : i32
    %c0_i32_1 = arith.constant 0 : i32
    return %c0_i32, %c0_i32_0 : i32, i32
  }
  func.func @transform_1(%arg0: i32, %arg1: i32, %arg2: memref<32xi32, #tpu.memory_space<smem>>) -> (i32, i32) {
    %c0_i32 = arith.constant 0 : i32
    %c0_i32_0 = arith.constant 0 : i32
    return %arg1, %c0_i32 : i32, i32
  }
  func.func @transform_2(%arg0: i32, %arg1: i32, %arg2: memref<32xi32, #tpu.memory_space<smem>>) -> (i32, i32) {
    %c0_i32 = arith.constant 0 : i32
    %c0_i32_0 = arith.constant 0 : i32
    return %arg1, %c0_i32 : i32, i32
  }
  func.func @transform_3(%arg0: i32, %arg1: i32, %arg2: memref<32xi32, #tpu.memory_space<smem>>) -> (i32, i32) {
    %c0_i32 = arith.constant 0 : i32
    %c0_i32_0 = arith.constant 0 : i32
    return %arg1, %c0_i32 : i32, i32
  }
  func.func @transform_4(%arg0: i32, %arg1: i32, %arg2: memref<32xi32, #tpu.memory_space<smem>>) -> (i32, i32) {
    %c0_i32 = arith.constant 0 : i32
    %c0_i32_0 = arith.constant 0 : i32
    %c0_i32_1 = arith.constant 0 : i32
    return %c0_i32, %c0_i32_0 : i32, i32
  }
  func.func @transform_5(%arg0: i32, %arg1: i32, %arg2: memref<32xi32, #tpu.memory_space<smem>>) -> (i32, i32) {
    %c0_i32 = arith.constant 0 : i32
    %c0_i32_0 = arith.constant 0 : i32
    %c0_i32_1 = arith.constant 0 : i32
    return %c0_i32, %c0_i32_0 : i32, i32
  }
  func.func @transform_6(%arg0: i32, %arg1: i32, %arg2: memref<32xi32, #tpu.memory_space<smem>>) -> (i32, i32) {
    %c0_i32 = arith.constant 0 : i32
    %c0_i32_0 = arith.constant 0 : i32
    %c0_i32_1 = arith.constant 0 : i32
    return %c0_i32, %c0_i32_0 : i32, i32
  }
  func.func @transform_7(%arg0: i32, %arg1: i32, %arg2: memref<32xi32, #tpu.memory_space<smem>>) -> (i32, i32) {
    %c0_i32 = arith.constant 0 : i32
    %c0_i32_0 = arith.constant 0 : i32
    %c0_i32_1 = arith.constant 0 : i32
    return %c0_i32, %c0_i32_0 : i32, i32
  }
  func.func @transform_8(%arg0: i32, %arg1: i32, %arg2: memref<32xi32, #tpu.memory_space<smem>>) -> (i32, i32, i32) {
    %c0_i32 = arith.constant 0 : i32
    %c0_i32_0 = arith.constant 0 : i32
    %c0_i32_1 = arith.constant 0 : i32
    return %arg0, %c0_i32, %c0_i32_0 : i32, i32, i32
  }
  func.func @transform_9(%arg0: i32, %arg1: i32, %arg2: memref<32xi32, #tpu.memory_space<smem>>) -> (i32, i32, i32) {
    %c0_i32 = arith.constant 0 : i32
    %c0_i32_0 = arith.constant 0 : i32
    %c0_i32_1 = arith.constant 0 : i32
    return %arg0, %c0_i32, %c0_i32_0 : i32, i32, i32
  }
  func.func @transform_10(%arg0: i32, %arg1: i32, %arg2: memref<32xi32, #tpu.memory_space<smem>>) -> (i32, i32, i32) {
    %c0_i32 = arith.constant 0 : i32
    %c0_i32_0 = arith.constant 0 : i32
    %c0_i32_1 = arith.constant 0 : i32
    return %arg0, %c0_i32, %c0_i32_0 : i32, i32, i32
  }
  func.func @transform_11(%arg0: i32, %arg1: i32, %arg2: memref<32xi32, #tpu.memory_space<smem>>) -> (i32, i32, i32) {
    %c0_i32 = arith.constant 0 : i32
    %c0_i32_0 = arith.constant 0 : i32
    %c0_i32_1 = arith.constant 0 : i32
    return %arg0, %c0_i32, %c0_i32_0 : i32, i32, i32
  }
  func.func @transform_12(%arg0: i32, %arg1: i32, %arg2: memref<32xi32, #tpu.memory_space<smem>>) -> (i32, i32, i32) {
    %c0_i32 = arith.constant 0 : i32
    %c0_i32_0 = arith.constant 0 : i32
    %c0_i32_1 = arith.constant 0 : i32
    return %arg0, %c0_i32, %c0_i32_0 : i32, i32, i32
  }
  func.func @transform_13(%arg0: i32, %arg1: i32, %arg2: memref<32xi32, #tpu.memory_space<smem>>) -> (i32, i32, i32) {
    %c0_i32 = arith.constant 0 : i32
    %c0_i32_0 = arith.constant 0 : i32
    %c0_i32_1 = arith.constant 0 : i32
    return %arg0, %c0_i32, %c0_i32_0 : i32, i32, i32
  }
  func.func @transform_14(%arg0: i32, %arg1: i32, %arg2: memref<32xi32, #tpu.memory_space<smem>>) -> (i32, i32, i32) {
    %c0_i32 = arith.constant 0 : i32
    %c0_i32_0 = arith.constant 0 : i32
    %c0_i32_1 = arith.constant 0 : i32
    return %arg0, %c0_i32, %c0_i32_0 : i32, i32, i32
  }
  func.func @transform_15(%arg0: i32, %arg1: i32, %arg2: memref<32xi32, #tpu.memory_space<smem>>) -> (i32, i32, i32) {
    %c0_i32 = arith.constant 0 : i32
    %c0_i32_0 = arith.constant 0 : i32
    %c0_i32_1 = arith.constant 0 : i32
    return %arg0, %c0_i32, %c0_i32_0 : i32, i32, i32
  }
  func.func @transform_16(%arg0: i32, %arg1: i32, %arg2: memref<32xi32, #tpu.memory_space<smem>>) -> (i32, i32, i32) {
    %c0_i32 = arith.constant 0 : i32
    %c0_i32_0 = arith.constant 0 : i32
    %c0_i32_1 = arith.constant 0 : i32
    return %arg0, %c0_i32, %c0_i32_0 : i32, i32, i32
  }
  func.func @transform_17(%arg0: i32, %arg1: i32, %arg2: memref<32xi32, #tpu.memory_space<smem>>) -> (i32, i32, i32) {
    %c0_i32 = arith.constant 0 : i32
    %c0_i32_0 = arith.constant 0 : i32
    %c0_i32_1 = arith.constant 0 : i32
    return %arg0, %c0_i32, %c0_i32_0 : i32, i32, i32
  }
  func.func @transform_18(%arg0: i32, %arg1: i32, %arg2: memref<32xi32, #tpu.memory_space<smem>>) -> (i32, i32, i32) {
    %c0_i32 = arith.constant 0 : i32
    %c0_i32_0 = arith.constant 0 : i32
    %c0_i32_1 = arith.constant 0 : i32
    return %arg0, %c0_i32, %c0_i32_0 : i32, i32, i32
  }
  func.func @transform_19(%arg0: i32, %arg1: i32, %arg2: memref<32xi32, #tpu.memory_space<smem>>) -> (i32, i32) {
    %c0_i32 = arith.constant 0 : i32
    %c0_i32_0 = arith.constant 0 : i32
    %c0_i32_1 = arith.constant 0 : i32
    return %c0_i32, %c0_i32_0 : i32, i32
  }
}

</mosaic_0001>

<bundles_post_ra>
// kernel: tpu_custom_call.1
= control target key start
LH: loop header
LB: loop body
LE: loop exit
PB: predicated region body
PF: predicated region fallthrough
CT: control target
= control target key end

     0   :  { %s5467_s0 = inlined_call_operand.hbm [shape: s32[32], index: 0, kind: input, shape index: {}]   ;;  %s5468_s1 = inlined_call_operand.vmem [shape: f32[8,128], index: 1, kind: input, shape index: {}]   ;;  %s5469_s2 = inlined_call_operand.vmem [shape: bf16[32,8], index: 2, kind: input, shape index: {}]   ;;  %s5470_s3 = inlined_call_operand.vmem [shape: bf16[32,8], index: 3, kind: input, shape index: {}]   ;;  %s5471_s4 = inlined_call_operand.hbm [shape: bf16[32,128], index: 4, kind: input, shape index: {}]   ;;  %s5472_s5 = inlined_call_operand.vmem [shape: f32[8,1], index: 5, kind: input, shape index: {}]   ;;  %s5473_s6 = inlined_call_operand.vmem [shape: f32[8,1], index: 6, kind: input, shape index: {}]   ;;  %s5474_s7 = inlined_call_operand.vmem [shape: f32[8,1], index: 7, kind: input, shape index: {}]   ;;  %s5475_s8 = inlined_call_operand.vmem [shape: f32[8,1], index: 8, kind: input, shape index: {}]   ;;  %s5476_s9 = inlined_call_operand.hbm [shape: bf16[2,128,128], index: 9, kind: input, shape index: {}]   ;;  %s5477_s10 = inlined_call_operand.hbm [shape: bf16[2,128,128], index: 10, kind: input, shape index: {}]   ;;  %s5478_s11 = inlined_call_operand.hbm [shape: bf16[2,128,128], index: 11, kind: input, shape index: {}]   ;;  %s5479_s12 = inlined_call_operand.hbm [shape: f32[2,1,128], index: 12, kind: input, shape index: {}]   ;;  %s5480_s13 = inlined_call_operand.hbm [shape: bf16[2,128,128], index: 13, kind: input, shape index: {}]   ;;  %s5481_s14 = inlined_call_operand.hbm [shape: bf16[2,640,384], index: 14, kind: input, shape index: {}]   ;;  %s5482_s15 = inlined_call_operand.hbm [shape: f32[2,1,128], index: 15, kind: input, shape index: {}]   ;;  %s5483_s16 = inlined_call_operand.vmem [shape: bf16[2,128,128], index: 16, kind: input, shape index: {}]   ;;  %s5484_s17 = inlined_call_operand.vmem [shape: f32[2,1,128], index: 17, kind: input, shape index: {}]   ;;  %s5485_s18 = inlined_call_operand.vmem [shape: f32[2,1,128], index: 18, kind: input, shape index: {}]   ;;  %s5486_s19 = inlined_call_operand.vmem [shape: f32[2,1,128], index: 19, kind: input, shape index: {}]   ;;  %s5487_s20 = inlined_call_operand.hbm [shape: f32[8,128], index: 20, kind: output, shape index: {}]  }
   0x1   :  { %5523 = sst [smem:[#allocation48_spill]] %s5467_s0 }
   0x2   :  { %5524 = sst [smem:[#allocation49_spill]] %s5468_s1  ;;  %s5544_s23 = sld [smem:[#allocation48_spill]] }
   0x3   :  { %5525 = sst [smem:[#allocation50_spill]] %s5469_s2 }
   0x4   :  { %5526 = sst [smem:[#allocation51_spill]] %s5470_s3 }
   0x5   :  { %5527 = sst [smem:[#allocation52_spill]] %s5471_s4 }
   0x6   :  { %5528 = sst [smem:[#allocation53_spill]] %s5472_s5 }
   0x7   :  { %5529 = sst [smem:[#allocation54_spill]] %s5473_s6 }
   0x8   :  { %5530 = sst [smem:[#allocation55_spill]] %s5474_s7  ;;  %s4107_s7 = scalar_lea.hbm %s5544_s23, 16 }
   0x9   :  { %5531 = sst [smem:[#allocation56_spill]] %s5475_s8  ;;  %p4108_p0 = scmp.ne.s32.totalorder %s5544_s23, %s4107_s7 }
   0xa   :  { %5532 = sst [smem:[#allocation57_spill]] %s5476_s9  ;;  %p4111_p1 = scmp.lt.u32.totalorder %s4107_s7, %s5544_s23 }
   0xb   :  { %5533 = sst [smem:[#allocation58_spill]] %s5477_s10 }
   0xc   :  { %5534 = sst [smem:[#allocation59_spill]] %s5478_s11  ;;  %p4113_p2 = pnand %p4111_p1, %p4108_p0 }
   0xd   :  { %5535 = sst [smem:[#allocation60_spill]] %s5479_s12 }
   0xe   :  { %5536 = sst [smem:[#allocation61_spill]] %s5480_s13 }
   0xf   :  { %5537 = sst [smem:[#allocation62_spill]] %s5481_s14 }
  0x10   :  { %5538 = sst [smem:[#allocation63_spill]] %s5482_s15 }
  0x11   :  { %5539 = sst [smem:[#allocation64_spill]] %s5483_s16 }
  0x12   :  { %5540 = sst [smem:[#allocation65_spill]] %s5484_s17 }
  0x13   :  { %5541 = sst [smem:[#allocation66_spill]] %s5485_s18 }
  0x14   :  { %5542 = sst [smem:[#allocation67_spill]] %s5486_s19 }
  0x15   :  { %5543 = sst [smem:[#allocation68_spill]] %s5487_s20 }
  0x16   :  { %4116 = shalt.err (!%p4113_p2)  }
  0x17   :  { %s4505_s26 = smov [#allocation11]  }
  0x18   :  { %26 = dma.hbm_to_smem %s5544_s23, 16, %s4505_s26, [#allocation10] }
  0x19   :  { %4431 = dma.done.wait [#allocation10], 16 }
  0x1a   :  { %4432 = vsyncadd [#allocation10], 4294967280 }
  0x1b   :  { %28 = sfence }
  0x1c   :  { %29 = vsyncpa [#allocation13], 0 }
  0x1d   :  { %31 = vsyncpa [#allocation13 + $0x1], 0 }
  0x1e   :  { %32 = vsyncpa [#allocation16], 0 }
  0x1f   :  { %34 = vsyncpa [#allocation16 + $0x1], 0 }
  0x20   :  { %35 = vsyncpa [#allocation19], 0 }
  0x21   :  { %37 = vsyncpa [#allocation19 + $0x1], 0 }
  0x22   :  { %38 = vsyncpa [#allocation22], 0 }
  0x23   :  { %40 = vsyncpa [#allocation22 + $0x1], 0 }
  0x24   :  { %41 = vsyncpa [#allocation25], 0 }
  0x25   :  { %43 = vsyncpa [#allocation25 + $0x1], 0 }
  0x26   :  { %44 = vsyncpa [#allocation14], 0  ;;  %s4645_s7 = smov 0   ;;  %s4647_s4 = smov 0  }
  0x27   :  { %s4649_s29 = smov 0   ;;  %s4651_s30 = smov 0  }
  0x28   :  { %s4653_s0 = smov 0   ;;  %s4655_s21 = smov 0  }
  0x29   :  { %s4657_s1 = smov 0   ;;  %s4659_s22 = smov 0  }
  0x2a   :  { %s4661_s23 = smov 0   ;;  %s4663_s24 = smov 0  }
  0x2b   :  { %s4665_s2 = smov 0  }
  0x2c LB: > { %5545 = sst [smem:[#allocation34_spill]] %s4463_s4  ;;  %p5495_p3 = scmp.eq.s32.totalorder %s4499_s2, 0  ;;  %s4499_s2 = sphi %s4665_s2, %s50_s2   ;;  %s4495_s24 = sphi %s4663_s24, %s5633_s24   ;;  %s4491_s23 = sphi %s4661_s23, %s5632_s23   ;;  %s4487_s22 = sphi %s4659_s22, %s5631_s22   ;;  %s4483_s1 = sphi %s4657_s1, %s5630_s1   ;;  %s4479_s21 = sphi %s4655_s21, %s5629_s21   ;;  %s4475_s0 = sphi %s4653_s0, %s5628_s0   ;;  %s4471_s30 = sphi %s4651_s30, %s5627_s30   ;;  %s4467_s29 = sphi %s4649_s29, %s5626_s29   ;;  %s4463_s4 = sphi %s4647_s4, %s5625_s4   ;;  %s4459_s7 = sphi %s4645_s7, %s5624_s7  }
  0x2d   : > { %5546 = sst [smem:[#allocation35_spill]] %s4467_s29  ;;  %p259_p4 = scmp.ne.s32.totalorder %s4467_s29, %s4463_s4 }
  0x2e   : > { %5547 = sst [smem:[#allocation36_spill]] %s4475_s0  ;;  %p5494_p5 = scmp.lt.s32.totalorder %s4499_s2, 4 }
  0x2f   : > { %5548 = sst [smem:[#allocation37_spill]] %s4479_s21  ;;  %p261_p6 = por %p259_p4, %p5495_p3 }
  0x30   : > { %5549 = sst [smem:[#allocation38_spill]] %s4483_s1  ;;  %s4708_s3 = sand.u32 1, %s4499_s2  }
  0x31   : > { %5550 = sst [smem:[#allocation39_spill]] %s4487_s22  ;;  %s4711_s26 = sand.u32 1, %s4467_s29  }
  0x32   : > { %5551 = sst [smem:[#allocation40_spill]] %s4491_s23  ;;  %s4714_s27 = sshll.u32 %s4711_s26, 6 }
  0x33   : > { %5552 = sst [smem:[#allocation41_spill]] %s4495_s24  ;;  %s4717_s28 = sshll.u32 %s4495_s24, 10 }
  0x34   : > { %s5553_s9 = sld [smem:[#allocation57_spill]]  ;;  %s628_s8 = scalar_lea.vmem [#allocation15], %s4714_s27 }
  0x35   : > { %s635_s5 = sshll.u32 %s628_s8, 4  ;;  %p4730_p7 = pnand %p5494_p5, %p261_p6  ;;  %s4726_s5 = int_to_ptr.vmem [resolvable:$true] %s635_s5 }
  0x37   : > { %s5554_s19 = scalar_select %p4730_p7, 1, 0 }
  0x38   : > { %p4741_p11 = pneg %p4730_p7 }
  0x3a   : > { %s4723_s25 = scalar_lea.hbm %s5553_s9, %s4717_s28  ;;  %s4122_s17 = scalar_lea.hbm %s5553_s9, 2048 }
  0x3b   : > { %s4117_s6 = scalar_lea.hbm %s4723_s25, 1024  ;;  %p4123_p0 = scmp.lt.u32.totalorder %s4723_s25, %s5553_s9 }
  0x3c   : > { %p4118_p10 = scmp.ne.s32.totalorder %s4723_s25, %s4117_s6  ;;  %p4124_p1 = scmp.lt.u32.totalorder %s4122_s17, %s4117_s6 }
  0x3d   : > { %p4126_p4 = scmp.lt.u32.totalorder %s4117_s6, %s4723_s25 }
  0x3e   : > { %p4120_p12 = pnand %p4741_p11, %p4118_p10  ;;  %p4125_p2 = por %p4124_p1, %p4123_p0 }
  0x40   : > { %p4121_p13 = pneg %p4120_p12  ;;  %p4127_p6 = por %p4126_p4, %p4125_p2 }
  0x42   : > { %p4128_p5 = pnand %p4127_p6, %p4121_p13 }
  0x44   : > { %4131 = shalt.err (!%p4128_p5)
}
  0x45   : > { %s4132_s18 = scalar_lea.vmem %s4726_s5, 1024  ;;  %s4506_s16 = smov [#allocation15]  }
  0x46   : > { %p4133_p10 = scmp.ne.s32.totalorder %s4726_s5, %s4132_s18  ;;  %s4137_s8 = sshll.u32 %s4506_s16, 4  ;;  %s4138_s8 = int_to_ptr.vmem [resolvable:$false] %s4137_s8 }
  0x47   : > { %s4139_s1 = scalar_lea.vmem %s4138_s8, 2048  ;;  %p4140_p8 = scmp.lt.s32.totalorder %s4726_s5, %s4138_s8 }
  0x48   : > { %p4135_p12 = pnand %p4133_p10, %p4741_p11  ;;  %p4141_p9 = scmp.lt.s32.totalorder %s4139_s1, %s4132_s18 }
  0x4a   : > { %p4136_p3 = pneg %p4135_p12  ;;  %p4142_p0 = por %p4141_p9, %p4140_p8 }
  0x4c   : > { %p4143_p1 = pnand %p4142_p0, %p4136_p3 }
  0x4e   : > { %4146 = shalt.err (!%p4143_p1)
}
  0x4f   : > { %s5497_s17 = smov 64   ;;  %s5499_s22 = smov 4  }
  0x50   : > { %s5556_s18 = scalar_lea.sflag [#allocation16], %s4708_s3  ;;  %p5557_p3 = scmp.lt.s32.totalorder %s4499_s2, 5 }
  0x51   : > { %3747 = dma.hbm_to_vmem [thread:$0]  (!%p4730_p7), %s4723_s25, 1024, %s4726_s5, %s5556_s18, %s5497_s17, %s5497_s17, %s5499_s22  }
  0x52   : > { %p5558_p5 = scmp.ge.s32.totalorder %s4499_s2, 1  ;;  %s5561_s11 = sld [smem:[#allocation59_spill]] }
  0x53   : > { %s670_s9 = scalar_lea.vmem [#allocation18], %s4714_s27  ;;  %s5502_s5 = scalar_lea.sflag [#allocation19], %s4708_s3 }
  0x54   : > { %p4773_p8 = pnand %p5558_p5, %p5557_p3  ;;  %s677_s15 = sshll.u32 %s670_s9, 4  ;;  %s4784_s15 = int_to_ptr.vmem [resolvable:$true] %s677_s15 }
  0x56   : > { %s5559_s6 = scalar_select %p4773_p8, 1, 0 }
  0x58   : > { %5560 = sst [smem:[#allocation42_spill]] %s5559_s6  ;;  %s4781_s1 = scalar_lea.hbm %s5561_s11, %s4717_s28 }
  0x59   : > { %s4147_s25 = scalar_lea.hbm %s4781_s1, 1024  ;;  %s4152_s16 = scalar_lea.hbm %s5561_s11, 2048 }
  0x5a   : > { %p4148_p9 = scmp.ne.s32.totalorder %s4781_s1, %s4147_s25  ;;  %p4153_p4 = scmp.lt.u32.totalorder %s4781_s1, %s5561_s11 }
  0x5b   : > { %p4154_p6 = scmp.lt.u32.totalorder %s4152_s16, %s4147_s25  ;;  %p4156_p12 = scmp.lt.u32.totalorder %s4147_s25, %s4781_s1 }
  0x5c   : > { %p4150_p13 = pnand %p4148_p9, %p4741_p11 }
  0x5d   : > { %p4155_p10 = por %p4154_p6, %p4153_p4 }
  0x5e   : > { %p4151_p2 = pneg %p4150_p13 }
  0x5f   : > { %p4157_p0 = por %p4156_p12, %p4155_p10 }
  0x61   : > { %p4158_p1 = pnand %p4157_p0, %p4151_p2 }
  0x63   : > { %4161 = shalt.err (!%p4158_p1)
}
  0x64   : > { %s4162_s9 = scalar_lea.vmem %s4784_s15, 1024  ;;  %s4509_s17 = smov [#allocation18]  }
  0x65   : > { %p4163_p3 = scmp.ne.s32.totalorder %s4784_s15, %s4162_s9  ;;  %s4167_s18 = sshll.u32 %s4509_s17, 4  ;;  %s4168_s18 = int_to_ptr.vmem [resolvable:$false] %s4167_s18 }
  0x66   : > { %s4169_s22 = scalar_lea.vmem %s4168_s18, 2048  ;;  %p4170_p13 = scmp.lt.s32.totalorder %s4784_s15, %s4168_s18 }
  0x67   : > { %p4165_p5 = pnand %p4163_p3, %p4741_p11  ;;  %p4171_p8 = scmp.lt.s32.totalorder %s4169_s22, %s4162_s9 }
  0x69   : > { %p4166_p9 = pneg %p4165_p5  ;;  %p4172_p4 = por %p4171_p8, %p4170_p13 }
  0x6b   : > { %p4173_p6 = pnand %p4172_p4, %p4166_p9 }
  0x6d   : > { %4176 = shalt.err (!%p4173_p6)
}
  0x6e   : > { %s5562_s25 = smov 4   ;;  %s5563_s16 = smov 64  }
  0x6f   : > { %3753 = dma.hbm_to_vmem [thread:$0]  (!%p4730_p7), %s4781_s1, 1024, %s4784_s15, %s5502_s5, %s5563_s16, %s5563_s16, %s5562_s25  }
  0x70   : > { %s5564_s13 = sld [smem:[#allocation61_spill]]  ;;  %s708_s18 = scalar_lea.vmem [#allocation21], %s4714_s27 }
  0x71   : > { %s715_s22 = sshll.u32 %s708_s18, 4  ;;  %s5503_s11 = scalar_lea.sflag [#allocation22], %s4708_s3  ;;  %s4820_s22 = int_to_ptr.vmem [resolvable:$true] %s715_s22 }
  0x76   : > { %s4817_s9 = scalar_lea.hbm %s5564_s13, %s4717_s28  ;;  %s4182_s8 = scalar_lea.hbm %s5564_s13, 2048 }
  0x77   : > { %s4177_s6 = scalar_lea.hbm %s4817_s9, 1024  ;;  %p4183_p12 = scmp.lt.u32.totalorder %s4817_s9, %s5564_s13 }
  0x78   : > { %p4178_p8 = scmp.ne.s32.totalorder %s4817_s9, %s4177_s6  ;;  %p4184_p0 = scmp.lt.u32.totalorder %s4182_s8, %s4177_s6 }
  0x79   : > { %p4186_p3 = scmp.lt.u32.totalorder %s4177_s6, %s4817_s9 }
  0x7a   : > { %p4180_p2 = pnand %p4178_p8, %p4741_p11  ;;  %p4185_p1 = por %p4184_p0, %p4183_p12 }
  0x7c   : > { %p4181_p10 = pneg %p4180_p2  ;;  %p4187_p5 = por %p4186_p3, %p4185_p1 }
  0x7e   : > { %p4188_p9 = pnand %p4187_p5, %p4181_p10 }
  0x80   : > { %4191 = shalt.err (!%p4188_p9)
}
  0x81   : > { %s4192_s18 = scalar_lea.vmem %s4820_s22, 1024  ;;  %s4510_s15 = smov [#allocation21]  }
  0x82   : > { %p4193_p13 = scmp.ne.s32.totalorder %s4820_s22, %s4192_s18  ;;  %s4197_s1 = sshll.u32 %s4510_s15, 4  ;;  %s4198_s1 = int_to_ptr.vmem [resolvable:$false] %s4197_s1 }
  0x83   : > { %s4199_s5 = scalar_lea.vmem %s4198_s1, 2048  ;;  %p4200_p8 = scmp.lt.s32.totalorder %s4820_s22, %s4198_s1 }
  0x84   : > { %p4195_p4 = pnand %p4193_p13, %p4741_p11  ;;  %p4201_p2 = scmp.lt.s32.totalorder %s4199_s5, %s4192_s18 }
  0x86   : > { %p4196_p6 = pneg %p4195_p4  ;;  %p4202_p12 = por %p4201_p2, %p4200_p8 }
  0x88   : > { %p4203_p0 = pnand %p4202_p12, %p4196_p6 }
  0x8a   : > { %4206 = shalt.err (!%p4203_p0)
}
  0x8b   : > { %3759 = dma.hbm_to_vmem [thread:$0]  (!%p4730_p7), %s4817_s9, 1024, %s4820_s22, %s5503_s11, %s5563_s16, %s5563_s16, %s5562_s25  }
  0x8c   : > { %s4850_s6 = sadd.s32 4294967295, %s4499_s2   ;;  %s59_s8 = sadd.s32 1, %s4491_s23 }
  0x8d   : > { %5565 = sst [smem:[#allocation43_spill]] %s4850_s6  ;;  %p60_p10 = scmp.ge.s32.totalorder %s59_s8, 2 }
  0x8e   : > { %s62_s17 = sadd.s32 1, %s4495_s24  ;;  %s142_s18 = sadd.s32 1, %s4479_s21 }
  0x8f   : > { %p149_p1 = scmp.ne.s32.totalorder %s4479_s21, %s4475_s0  ;;  %s5635_s8 = smov (%p60_p10, %s59_s8), 0 }
  0x90   : > { %5566 = sst [smem:[#allocation44_spill]] %s5635_s8  ;;  %s5637_s17 = smov (!%p60_p10, %s62_s17), %s4495_s24 }
  0x91   : > { %s139_s9 = ssub.s32 %s4491_s23, %s5635_s8  ;;  %p5567_p3 = scmp.eq.s32.totalorder %s4499_s2, 0 }
  0x92   : > { %p64_p9 = scmp.ge.s32.totalorder %s5637_s17, 2  ;;  %p140_p13 = scmp.eq.s32.totalorder %s139_s9, 0 }
  0x93   : > { %p4864_p5 = por %p5567_p3, %p149_p1  ;;  %p155_p4 = scmp.ne.s32.totalorder %s4475_s0, %s4471_s30 }
  0x94   : > { %p156_p6 = scmp.eq.s32.totalorder %s4850_s6, 0  ;;  %s5639_s17 = smov (%p64_p9, %s5637_s17), 0 }
  0x95   : > { %5569 = sst [smem:[#allocation45_spill]] %s5639_s17  ;;  %s249_s5 = ssub.s32 %s4495_s24, %s5639_s17 }
  0x96   : > { %s4874_s15 = scalar_select %p140_p13, %s4479_s21, %s142_s18  }
  0x97   : > { %p4876_p8 = por %p156_p6, %p155_p4  ;;  %p250_p2 = scmp.eq.s32.totalorder %s249_s5, 0 }
  0x98   : > { %5570 = sst [smem:[#allocation46_spill]] %s4874_s15  ;;  %p265_p12 = scmp.ne.s32.totalorder %s4463_s4, %s4459_s7 }
  0x99   : > { %s5571_s1 = scalar_select %p4876_p8, 1, 0 }
  0x9a   : > { %s603_s11 = sand.u32 1, %s4479_s21   ;;  %s3459_s13 = sshll.u32 %s4491_s23, 7 }
  0x9b   : > { %s5572_s8 = sadd.s32 1, %s4467_s29  ;;  %p4891_p0 = por %p265_p12, %p156_p6 }
  0x9c   : > { %s4889_s14 = scalar_select %p250_p2, %s4467_s29, %s5572_s8  }
  0x9d   : > { %s5574_s30 = scalar_select %p4891_p0, 1, 0 }
  0x9e   : > { %5573 = sst [smem:[#allocation47_spill]] %s4889_s14  ;;  %s3245_s9 = sshll.u32 %s603_s11, 3 }
  0x9f   : > { %s5575_s15 = sld [smem:[#allocation52_spill]]  ;;  %p5576_p10 = scmp.lt.s32.totalorder %s4499_s2, 4 }
  0xa0   : > { %s607_s8 = scalar_lea.vmem [#allocation12], %s3245_s9  ;;  %s4910_s17 = scalar_lea.sflag [#allocation13], %s603_s11 }
  0xa1   : > { %p4904_p1 = pnand %p5576_p10, %p4864_p5  ;;  %s614_s5 = sshll.u32 %s607_s8, 4  ;;  %s4908_s5 = int_to_ptr.vmem [resolvable:$true] %s614_s5 }
  0xa3   : > { %p4209_p9 = pneg %p4904_p1 }
  0xa5   : > { %s4898_s0 = scalar_lea.hbm %s5575_s15, %s3459_s13  ;;  %s4212_s18 = scalar_lea.hbm %s5575_s15, 256 }
  0xa6   : > { %s4207_s13 = scalar_lea.hbm %s4898_s0, 128  ;;  %p4213_p5 = scmp.lt.u32.totalorder %s4898_s0, %s5575_s15 }
  0xa7   : > { %p4208_p3 = scmp.ne.s32.totalorder %s4898_s0, %s4207_s13  ;;  %p4214_p6 = scmp.lt.u32.totalorder %s4212_s18, %s4207_s13 }
  0xa8   : > { %p4216_p12 = scmp.lt.u32.totalorder %s4207_s13, %s4898_s0 }
  0xa9   : > { %p4210_p13 = pnand %p4209_p9, %p4208_p3  ;;  %p4215_p2 = por %p4214_p6, %p4213_p5 }
  0xab   : > { %p4211_p4 = pneg %p4210_p13  ;;  %p4217_p10 = por %p4216_p12, %p4215_p2 }
  0xad   : > { %p4218_p0 = pnand %p4217_p10, %p4211_p4 }
  0xaf   : > { %4221 = shalt.err (!%p4218_p0)
}
  0xb0   : > { %s4222_s11 = scalar_lea.vmem %s4908_s5, 128  ;;  %s4511_s9 = smov [#allocation12]  }
  0xb1   : > { %p4223_p3 = scmp.ne.s32.totalorder %s4908_s5, %s4222_s11  ;;  %s4227_s8 = sshll.u32 %s4511_s9, 4  ;;  %s4228_s8 = int_to_ptr.vmem [resolvable:$false] %s4227_s8 }
  0xb2   : > { %s4229_s21 = scalar_lea.vmem %s4228_s8, 256  ;;  %p4230_p7 = scmp.lt.s32.totalorder %s4908_s5, %s4228_s8 }
  0xb3   : > { %p4225_p13 = pnand %p4223_p3, %p4209_p9  ;;  %p4231_p5 = scmp.lt.s32.totalorder %s4229_s21, %s4222_s11 }
  0xb5   : > { %p4226_p8 = pneg %p4225_p13  ;;  %p4232_p6 = por %p4231_p5, %p4230_p7 }
  0xb7   : > { %p4233_p2 = pnand %p4232_p6, %p4226_p8 }
  0xb9   : > { %4236 = shalt.err (!%p4233_p2)
}
  0xba   : > { %3744 = dma.hbm_to_vmem [thread:$0]  (!%p4904_p1), %s4898_s0, 128, %s4908_s5, %s4910_s17, %s5563_s16, %s5563_s16, %s5562_s25  }
  0xbb   : > { %s5578_s10 = sld [smem:[#allocation58_spill]]  ;;  %s649_s7 = scalar_lea.vmem [#allocation17], %s4714_s27 }
  0xbc   : > { %s656_s22 = sshll.u32 %s649_s7, 4  ;;  %s4948_s22 = int_to_ptr.vmem [resolvable:$true] %s656_s22 }
  0xc1   : > { %s4945_s6 = scalar_lea.hbm %s5578_s10, %s4717_s28  ;;  %s4242_s17 = scalar_lea.hbm %s5578_s10, 2048 }
  0xc2   : > { %s4237_s18 = scalar_lea.hbm %s4945_s6, 1024  ;;  %p4243_p1 = scmp.lt.u32.totalorder %s4945_s6, %s5578_s10 }
  0xc3   : > { %p4238_p7 = scmp.ne.s32.totalorder %s4945_s6, %s4237_s18  ;;  %p4244_p9 = scmp.lt.u32.totalorder %s4242_s17, %s4237_s18 }
  0xc4   : > { %p4246_p12 = scmp.lt.u32.totalorder %s4237_s18, %s4945_s6 }
  0xc5   : > { %p4240_p8 = pnand %p4238_p7, %p4741_p11  ;;  %p4245_p4 = por %p4244_p9, %p4243_p1 }
  0xc7   : > { %p4241_p0 = pneg %p4240_p8  ;;  %p4247_p10 = por %p4246_p12, %p4245_p4 }
  0xc9   : > { %p4248_p3 = pnand %p4247_p10, %p4241_p0 }
  0xcb   : > { %4251 = shalt.err (!%p4248_p3)
}
  0xcc   : > { %s4252_s27 = scalar_lea.vmem %s4948_s22, 1024  ;;  %s4512_s9 = smov [#allocation17]  }
  0xcd   : > { %p4253_p13 = scmp.ne.s32.totalorder %s4948_s22, %s4252_s27  ;;  %s4257_s8 = sshll.u32 %s4512_s9, 4  ;;  %s4258_s8 = int_to_ptr.vmem [resolvable:$false] %s4257_s8 }
  0xce   : > { %s4259_s21 = scalar_lea.vmem %s4258_s8, 2048  ;;  %p4260_p2 = scmp.lt.s32.totalorder %s4948_s22, %s4258_s8 }
  0xcf   : > { %p4255_p5 = pnand %p4253_p13, %p4741_p11  ;;  %p4261_p7 = scmp.lt.s32.totalorder %s4259_s21, %s4252_s27 }
  0xd1   : > { %p4256_p6 = pneg %p4255_p5  ;;  %p4262_p8 = por %p4261_p7, %p4260_p2 }
  0xd3   : > { %p4263_p1 = pnand %p4262_p8, %p4256_p6 }
  0xd5   : > { %4266 = shalt.err (!%p4263_p1)
}
  0xd6   : > { %p5579_p0 = scmp.ne.s32.totalorder %s5554_s19, 0  ;;  %s5580_s23 = scalar_lea.sflag [#allocation16], %s4708_s3 }
  0xd7   : > { %s3257_s13 = sshll.u32 %s4495_s24, 4  ;;  %s690_s7 = scalar_lea.vmem [#allocation20], %s4711_s26 }
  0xd8   : > { %3750 = dma.hbm_to_vmem [thread:$0]  (!%p5579_p0), %s4945_s6, 1024, %s4948_s22, %s5580_s23, %s5563_s16, %s5563_s16, %s5562_s25  }
  0xd9   : > { %s697_s18 = sshll.u32 %s690_s7, 4  ;;  %s5581_s12 = sld [smem:[#allocation60_spill]]  ;;  %s698_s18 = int_to_ptr.vmem [resolvable:$true] %s697_s18 }
  0xdf   : > { %s695_s17 = scalar_lea.hbm %s5581_s12, %s3257_s13  ;;  %s4272_s9 = scalar_lea.hbm %s5581_s12, 32 }
  0xe0   : > { %s4267_s5 = scalar_lea.hbm %s695_s17, 16  ;;  %p4273_p10 = scmp.lt.u32.totalorder %s695_s17, %s5581_s12 }
  0xe1   : > { %p4268_p9 = scmp.ne.s32.totalorder %s695_s17, %s4267_s5  ;;  %p4274_p3 = scmp.lt.u32.totalorder %s4272_s9, %s4267_s5 }
  0xe2   : > { %p4276_p5 = scmp.lt.u32.totalorder %s4267_s5, %s695_s17 }
  0xe3   : > { %p4270_p4 = pnand %p4268_p9, %p4741_p11  ;;  %p4275_p13 = por %p4274_p3, %p4273_p10 }
  0xe5   : > { %p4271_p12 = pneg %p4270_p4  ;;  %p4277_p6 = por %p4276_p5, %p4275_p13 }
  0xe7   : > { %p4278_p2 = pnand %p4277_p6, %p4271_p12 }
  0xe9   : > { %4281 = shalt.err (!%p4278_p2)
}
  0xea   : > { %s4282_s16 = scalar_lea.vmem %s698_s18, 16  ;;  %s4513_s6 = smov [#allocation20]  }
  0xeb   : > { %p4283_p7 = scmp.ne.s32.totalorder %s698_s18, %s4282_s16  ;;  %s4287_s22 = sshll.u32 %s4513_s6, 4  ;;  %s4288_s22 = int_to_ptr.vmem [resolvable:$false] %s4287_s22 }
  0xec   : > { %s4289_s21 = scalar_lea.vmem %s4288_s22, 32  ;;  %p4290_p9 = scmp.lt.s32.totalorder %s698_s18, %s4288_s22 }
  0xed   : > { %p4285_p8 = pnand %p4283_p7, %p4741_p11  ;;  %p4291_p4 = scmp.lt.s32.totalorder %s4289_s21, %s4282_s16 }
  0xef   : > { %p4286_p1 = pneg %p4285_p8  ;;  %p4292_p0 = por %p4291_p4, %p4290_p9 }
  0xf1   : > { %p4293_p3 = pnand %p4292_p0, %p4286_p1 }
  0xf3   : > { %4296 = shalt.err (!%p4293_p3)
}
  0xf4   : > { %p5582_p10 = scmp.ne.s32.totalorder %s5554_s19, 0  ;;  %s5583_s23 = scalar_lea.sflag [#allocation19], %s4708_s3 }
  0xf5   : > { %s3718_s7 = smul.u32 960, %s4711_s26  ;;  %s5584_s28 = sld [smem:[#allocation62_spill]] }
  0xf6   : > { %3756 = dma.hbm_to_vmem [thread:$0]  (!%p5582_p10), %s695_s17, 16, %s698_s18, %s5583_s23  }
  0xf7   : > { %s3719_s11 = smul.u32 15360, %s4495_s24  ;;  %s729_s9 = scalar_lea.vmem [#allocation23], %s3718_s7 }
  0xf8   : > { %s736_s8 = sshll.u32 %s729_s9, 4  ;;  %s5004_s8 = int_to_ptr.vmem [resolvable:$true] %s736_s8 }
  0xfb   : > { %s5002_s27 = scalar_lea.hbm %s5584_s28, %s3719_s11  ;;  %s4302_s16 = scalar_lea.hbm %s5584_s28, 30720 }
  0xfc   : > { %s4297_s25 = scalar_lea.hbm %s5002_s27, 15360  ;;  %p4303_p5 = scmp.lt.u32.totalorder %s5002_s27, %s5584_s28 }
  0xfd   : > { %p4298_p0 = scmp.ne.s32.totalorder %s5002_s27, %s4297_s25  ;;  %p4304_p6 = scmp.lt.u32.totalorder %s4302_s16, %s4297_s25 }
  0xfe   : > { %p4306_p7 = scmp.lt.u32.totalorder %s4297_s25, %s5002_s27 }
  0xff   : > { %p4300_p12 = pnand %p4298_p0, %p4741_p11  ;;  %p4305_p2 = por %p4304_p6, %p4303_p5 }
 0x101   : > { %p4301_p13 = pneg %p4300_p12  ;;  %p4307_p8 = por %p4306_p7, %p4305_p2 }
 0x103   : > { %p4308_p1 = pnand %p4307_p8, %p4301_p13 }
 0x105   : > { %4311 = shalt.err (!%p4308_p1)
}
 0x106   : > { %s4312_s21 = scalar_lea.vmem %s5004_s8, 15360  ;;  %s4514_s23 = smov [#allocation23]  }
 0x107   : > { %p4313_p9 = scmp.ne.s32.totalorder %s5004_s8, %s4312_s21  ;;  %s4317_s7 = sshll.u32 %s4514_s23, 4  ;;  %s4318_s7 = int_to_ptr.vmem [resolvable:$false] %s4317_s7 }
 0x108   : > { %s4319_s11 = scalar_lea.vmem %s4318_s7, 30720  ;;  %p4320_p0 = scmp.lt.s32.totalorder %s5004_s8, %s4318_s7 }
 0x109   : > { %p4315_p4 = pnand %p4313_p9, %p4741_p11  ;;  %p4321_p12 = scmp.lt.s32.totalorder %s4319_s11, %s4312_s21 }
 0x10b   : > { %p4316_p3 = pneg %p4315_p4  ;;  %p4322_p5 = por %p4321_p12, %p4320_p0 }
 0x10d   : > { %p4323_p6 = pnand %p4322_p5, %p4316_p3 }
 0x10f   : > { %4326 = shalt.err (!%p4323_p6)
}
 0x110   : > { %s4515_s0 = smov 192   ;;  %s4516_s5 = smov 12  }
 0x111   : > { %s5585_s9 = scalar_lea.sflag [#allocation22], %s4708_s3  ;;  %s5586_s17 = sld [smem:[#allocation63_spill]] }
 0x112   : > { %3762 = dma.hbm_to_vmem [thread:$0]  (!%p5582_p10), %s5002_s27, 15360, %s5004_s8, %s5585_s9, %s4515_s0, %s4515_s0, %s4516_s5  }
 0x113   : > { %s749_s6 = scalar_lea.vmem [#allocation24], %s4711_s26  ;;  %s747_s21 = scalar_lea.sflag [#allocation25], %s4711_s26 }
 0x114   : > { %s756_s22 = sshll.u32 %s749_s6, 4  ;;  %s757_s22 = int_to_ptr.vmem [resolvable:$true] %s756_s22 }
 0x117   : > { %s5034_s16 = scalar_lea.hbm %s5586_s17, %s3257_s13  ;;  %s4332_s8 = scalar_lea.hbm %s5586_s17, 32 }
 0x118   : > { %s4327_s23 = scalar_lea.hbm %s5034_s16, 16  ;;  %p4333_p8 = scmp.lt.u32.totalorder %s5034_s16, %s5586_s17 }
 0x119   : > { %p4328_p13 = scmp.ne.s32.totalorder %s5034_s16, %s4327_s23  ;;  %p4334_p1 = scmp.lt.u32.totalorder %s4332_s8, %s4327_s23 }
 0x11a   : > { %p4336_p4 = scmp.lt.u32.totalorder %s4327_s23, %s5034_s16 }
 0x11b   : > { %p4330_p2 = pnand %p4328_p13, %p4741_p11  ;;  %p4335_p9 = por %p4334_p1, %p4333_p8 }
 0x11d   : > { %p4331_p7 = pneg %p4330_p2  ;;  %p4337_p3 = por %p4336_p4, %p4335_p9 }
 0x11f   : > { %p4338_p0 = pnand %p4337_p3, %p4331_p7 }
 0x121   : > { %4341 = shalt.err (!%p4338_p0)
}
 0x122   : > { %s4342_s26 = scalar_lea.vmem %s757_s22, 16  ;;  %s4517_s11 = smov [#allocation24]  }
 0x123   : > { %p4343_p12 = scmp.ne.s32.totalorder %s757_s22, %s4342_s26  ;;  %s4347_s0 = sshll.u32 %s4517_s11, 4  ;;  %s4348_s0 = int_to_ptr.vmem [resolvable:$false] %s4347_s0 }
 0x124   : > { %s4349_s5 = scalar_lea.vmem %s4348_s0, 32  ;;  %p4350_p13 = scmp.lt.s32.totalorder %s757_s22, %s4348_s0 }
 0x125   : > { %p4345_p5 = pnand %p4343_p12, %p4741_p11  ;;  %p4351_p2 = scmp.lt.s32.totalorder %s4349_s5, %s4342_s26 }
 0x127   : > { %p4346_p6 = pneg %p4345_p5  ;;  %p4352_p10 = por %p4351_p2, %p4350_p13 }
 0x129   : > { %p4353_p1 = pnand %p4352_p10, %p4346_p6 }
 0x12b   : > { %4356 = shalt.err (!%p4353_p1)
}
 0x12c   : > { %p5587_p8 = scmp.ne.s32.totalorder %s5554_s19, 0  ;;  %s5588_s9 = sld [smem:[#allocation42_spill]] }
 0x12e   : > { %3765 = dma.hbm_to_vmem [thread:$0]  (!%p5587_p8), %s5034_s16, 16, %s757_s22, %s747_s21  }
 0x132   : > { %p5589_p7 = scmp.ne.s32.totalorder %s5588_s9, 0 }
 0x133   : > { %s5590_s25 = sld [smem:[#allocation36_spill]] (!%p5589_p7)  ;;  %p5591_p11 = scmp.ne.s32.totalorder (!%p5589_p7), %s5571_s1, 0 }
 0x134   : > { %791 = sbr.rel (%p5589_p7) target bundleno = 1875 (0x753), region = 96 }
 0x139   : > { %s793_s20 = sand.u32 (!%p5589_p7), 1, %s5590_s25  }
 0x13a   : > { %s5058_s18 = sshll.u32 (!%p5589_p7), %s793_s20, 3  ;;  %s794_s6 = scalar_lea.sflag (!%p5589_p7), [#allocation13], %s793_s20 }
 0x13b   : > { %4434 = dma.done.wait (%p5591_p11), %s794_s6, 128  }
 0x13c   : > { %4436 = vsyncadd (%p5591_p11), %s794_s6, 4294967168  ;;  %s5592_s3 = sld [smem:[#allocation43_spill]]  ;;  %s5067_s16 = sand.u32 1, %s4463_s4  }
 0x13d   : > { %s3265_s22 = sshll.u32 %s5067_s16, 6  ;;  %p5593_p10 = scmp.ne.s32.totalorder %s5574_s30, 0 }
 0x13e   : > { %s5070_s27 = scalar_lea.vmem [#allocation15], %s3265_s22 }
 0x142   : > { %s802_s19 = sand.u32 1, %s5592_s3  }
 0x143   : > { %s803_s21 = scalar_lea.sflag [#allocation16], %s802_s19 }
 0x144   : > { %4438 = dma.done.wait (%p5593_p10), %s803_s21, 2048  }
 0x145   : > { %4440 = vsyncadd (%p5593_p10), %s803_s21, 4294965248  ;;  %s5076_s8 = scalar_lea.vmem [#allocation17], %s3265_s22  ;;  %s821_s1 = scalar_lea.sflag [#allocation19], %s802_s19 }
 0x146   : > { %s5078_s7 = scalar_lea.vmem [#allocation18], %s3265_s22 }
 0x147   : > { %4442 = dma.done.wait (%p5593_p10), %s821_s1, 1040  }
 0x148   : > { %4444 = vsyncadd (%p5593_p10), %s821_s1, 4294966256  ;;  %s838_s26 = scalar_lea.sflag [#allocation22], %s802_s19  ;;  %s5085_s11 = scalar_lea.vmem [#allocation21], %s3265_s22 }
 0x149   : > { %4446 = dma.done.wait (%p5593_p10), %s838_s26, 16384  }
 0x14a   : > { %4448 = vsyncadd (%p5593_p10), %s838_s26, 4294950912  ;;  %s3720_s0 = smul.u32 960, %s5067_s16  ;;  %s856_s9 = scalar_lea.sflag [#allocation25], %s5067_s16 }
 0x14c   : > { %s5092_s5 = scalar_lea.vmem [#allocation23], %s3720_s0 }
 0x14d   : > { %4450 = dma.done.wait (%p5593_p10), %s856_s9, 16  }
 0x14e   : > { %4452 = vsyncadd (%p5593_p10), %s856_s9, 4294967280  ;;  %s5594_s20 = sld [smem:[#allocation38_spill]]  ;;  %s5595_s6 = sld [smem:[#allocation39_spill]] }
 0x14f   : > { %s5597_s25 = sld [smem:[#allocation64_spill]]  ;;  %s5598_s12 = sld [smem:[#allocation50_spill]] }
 0x150   : > { %s5599_s24 = sld [smem:[#allocation51_spill]]  ;;  %s5600_s22 = sld [smem:[#allocation66_spill]] }
 0x151   : > { %s5601_s1 = sld [smem:[#allocation67_spill]] }
 0x154   : > { %s3269_s3 = sshll.u32 %s5594_s20, 1  ;;  %p978_p9 = scmp.lt.s32.totalorder %s5595_s6, 1 }
 0x155   : > { %p966_p4 = scmp.lt.s32.totalorder %s3269_s3, 3  ;;  %p993_p3 = scmp.eq.s32.totalorder %s5595_s6, 0 }
 0x156   : > { %s5641_s6 = smov (!%p978_p9, %s5595_s6), 1  ;;  %p994_p0 = scmp.eq.s32.totalorder %s5594_s20, 0 }
 0x157   : > { %s5643_s3 = smov (!%p966_p4, %s3269_s3), 3  ;;  %s3464_s19 = sshll.u32 %s5641_s6, 6 }
 0x158   : > { %s3270_s26 = sshll.u32 %s5643_s3, 2  ;;  %s5114_s13 = scalar_lea.vmem %s5597_s25, %s3464_s19 }
 0x159   : > { %s5119_s15 = scalar_lea.vmem %s5598_s12, %s3270_s26  ;;  %s5124_s14 = scalar_lea.vmem %s5599_s24, %s3270_s26 }
 0x15a   : > { %s988_s30 = scalar_lea.vmem %s5600_s22, %s5641_s6  ;;  %s991_s0 = scalar_lea.vmem %s5601_s1, %s5641_s6 }
 0x15b   : > { %p995_p12 = pnand %p994_p0, %p993_p3 }
 0x15c   : > { %s5602_s12 = sld [smem:[#allocation49_spill]] (!%p995_p12) }
 0x15d   : > { %998 = sbr.rel (%p995_p12) target bundleno = 356 (0x164), region = 132 }
 0x162   : > { %v999_v0 = vld [vmem:[%s5602_s12] sm:$0xff] (!%p995_p12) }
 0x163   : > { %1000 = vst [vmem:[#allocation2] sm:$0xff] (!%p995_p12), %v999_v0 }
 0x164 PF: > { %s5603_s28 = sld [smem:[#allocation38_spill]] }
 0x16a   : > { %p3275_p5 = scmp.ne.s32.totalorder %s5603_s28, 0 }
 0x16b   : > { %v3881_v1 = vld [vmem:[%s5070_s27] sm:$0xff] (!%p3275_p5)   ;;  %v4518_v2 = vmov (!%p3275_p5), 0.0   ;;  %v3883_v4 = vld [vmem:[%s5070_s27 + $0x8] sm:$0xff] (!%p3275_p5)   ;;  %vm4519_vm0 = vmmov (!%p3275_p5), 0   ;;  %v3885_v6 = vld [vmem:[%s5070_s27 + $0x10] sm:$0xff] (!%p3275_p5)  }
 0x16c   : > { %1003 = sbr.rel (%p3275_p5) target bundleno = 612 (0x264), region = 136  ;;  %3580 = vmatprep.subr.bf16.mxu0 (!%p3275_p5), %v4518_v2  ;;  %1219 = vst [vmem:[#allocation4] sm:$0xff] (!%p3275_p5), %v4518_v2  ;;  %1220 = vst [vmem:[#allocation5] sm:$0xff] (!%p3275_p5), %v4518_v2  ;;  %3600 = vmatprep.subr.bf16.mxu1 (!%p3275_p5), %v4518_v2  ;;  %v3882_v3 = vld [vmem:[%s5076_s8] sm:$0xff] (!%p3275_p5)   ;;  %v3884_v5 = vld [vmem:[%s5076_s8 + $0x8] sm:$0xff] (!%p3275_p5)  }
 0x16d   : > { %3581 = vmatpush3.bf16.msra.mxu0 (!%p3275_p5), %v3881_v1  ;;  %3596 = vmatprep.mubr.msk.bf16.mxu0 (!%p3275_p5), %vm4519_vm0, %v4518_v2  ;;  %v3886_v7 = vld [vmem:[%s5076_s8 + $0x10] sm:$0xff] (!%p3275_p5)   ;;  %v3887_v8 = vld [vmem:[%s5070_s27 + $0x18] sm:$0xff] (!%p3275_p5)   ;;  %v3889_v10 = vld [vmem:[%s5070_s27 + $0x20] sm:$0xff] (!%p3275_p5)   ;;  %v4520_v20 = vmov (!%p3275_p5), 1e+30  }
 0x16e   : > { %3601 = vmatpush3.bf16.msra.mxu1 (!%p3275_p5), %v3882_v3  ;;  %3582 = vmatprep.subr.bf16.mxu0 (!%p3275_p5), %v4518_v2  ;;  %v3888_v9 = vld [vmem:[%s5076_s8 + $0x18] sm:$0xff] (!%p3275_p5)   ;;  %v3890_v11 = vld [vmem:[%s5076_s8 + $0x20] sm:$0xff] (!%p3275_p5)   ;;  %v3891_v12 = vld [vmem:[%s5070_s27 + $0x28] sm:$0xff] (!%p3275_p5)   ;;  %1221 = vst [vmem:[#allocation6] sm:$0xff] (!%p3275_p5), %v4520_v20  ;;  %v4521_v21 = vmov (!%p3275_p5), -1e+30  }
 0x16f   : > { %3602 = vmatprep.subr.bf16.mxu1 (!%p3275_p5), %v4518_v2  ;;  %3616 = vmatprep.mubr.msk.bf16.mxu1 (!%p3275_p5), %vm4519_vm0, %v4518_v2  ;;  %v3892_v13 = vld [vmem:[%s5076_s8 + $0x28] sm:$0xff] (!%p3275_p5)   ;;  %v3893_v14 = vld [vmem:[%s5070_s27 + $0x30] sm:$0xff] (!%p3275_p5)   ;;  %v3895_v16 = vld [vmem:[%s5070_s27 + $0x38] sm:$0xff] (!%p3275_p5)   ;;  %1222 = vst [vmem:[#allocation7] sm:$0xff] (!%p3275_p5), %v4521_v21 }
 0x170   : > { %v3894_v15 = vld [vmem:[%s5076_s8 + $0x30] sm:$0xff] (!%p3275_p5)   ;;  %v1004_v17 = vld [vmem:[#allocation2] sm:$0xff] (!%p3275_p5) }
 0x171   : > { %3583 = vmatpush3.bf16.msra.mxu0 (!%p3275_p5), %v3883_v4  ;;  %v3896_v18 = vld [vmem:[%s5076_s8 + $0x38] sm:$0xff] (!%p3275_p5)   ;;  %v1021_v19 = vpack.c.bf16 (!%p3275_p5), %v1004_v17, %v1004_v17 }
 0x172   : > { %3603 = vmatpush3.bf16.msra.mxu1 (!%p3275_p5), %v3884_v5  ;;  %3584 = vmatprep.subr.bf16.mxu0 (!%p3275_p5), %v4518_v2 }
 0x173   : > { %3604 = vmatprep.subr.bf16.mxu1 %v4518_v2 }
 0x175   : > { %3585 = vmatpush3.bf16.msra.mxu0 %v3885_v6 }
 0x176   : > { %3605 = vmatpush3.bf16.msra.mxu1 %v3886_v7  ;;  %3586 = vmatprep.subr.bf16.mxu0 %v4518_v2 }
 0x177   : > { %3606 = vmatprep.subr.bf16.mxu1 %v4518_v2 }
 0x179   : > { %3587 = vmatpush3.bf16.msra.mxu0 %v3887_v8 }
 0x17a   : > { %3607 = vmatpush3.bf16.msra.mxu1 %v3888_v9  ;;  %3588 = vmatprep.subr.bf16.mxu0 %v4518_v2 }
 0x17b   : > { %3608 = vmatprep.subr.bf16.mxu1 %v4518_v2 }
 0x17d   : > { %3589 = vmatpush3.bf16.msra.mxu0 %v3889_v10 }
 0x17e   : > { %3609 = vmatpush3.bf16.msra.mxu1 %v3890_v11  ;;  %3590 = vmatprep.subr.bf16.mxu0 %v4518_v2 }
 0x17f   : > { %3610 = vmatprep.subr.bf16.mxu1 %v4518_v2 }
 0x181   : > { %3591 = vmatpush3.bf16.msra.mxu0 %v3891_v12 }
 0x182   : > { %3611 = vmatpush3.bf16.msra.mxu1 %v3892_v13  ;;  %3592 = vmatprep.subr.bf16.mxu0 %v4518_v2 }
 0x183   : > { %3612 = vmatprep.subr.bf16.mxu1 %v4518_v2 }
 0x185   : > { %3593 = vmatpush3.bf16.msra.mxu0 %v3893_v14 }
 0x186   : > { %3613 = vmatpush3.bf16.msra.mxu1 %v3894_v15  ;;  %3594 = vmatprep.subr.bf16.mxu0 %v4518_v2 }
 0x187   : > { %3614 = vmatprep.subr.bf16.mxu1 %v4518_v2 }
 0x189   : > { %3595 = vmatpush3.bf16.msra.mxu0 %v3895_v16 }
 0x18a   : > { %3615 = vmatpush3.bf16.msra.mxu1 %v3896_v18 }
 0x18c   : > { %3597 = vmatmul.mubr.bf16.vlgmr.msra.gmra.mrb[0].mxu0 %v1021_v19 }
 0x18d   : > { %3617 = vmatmul.mubr.bf16.vlgmr.msra.gmra.mrb[0].mxu1 %v1021_v19 }
 0x25f   : > { %v1104_v22 = vpop.f32.mrb[0].mxu0 }
 0x260   : > { %v1110_v23 = vpack.c.bf16 %v1104_v22, %v1104_v22  ;;  %v1210_v24 = vpop.f32.mrb[0].mxu1  ;;  %v3598_v25 = vpop.f32.mrb[1].mxu0 }
 0x261   : > { %v1216_v26 = vpack.c.bf16 %v1210_v24, %v1210_v24  ;;  %v3618_v27 = vpop.f32.mrb[1].mxu1  ;;  %v1107_v28 = vpop.f32.mrb[2].mxu0 }
 0x262   : > { %1111 = vst [vmem:[#allocation3] sm:$0xf] %v1110_v23  ;;  %v1213_v29 = vpop.f32.mrb[2].mxu1  ;;  %v3599_v30 = vpop.f32.mrb[3].mxu0 }
 0x263   : > { %1218 = vst [vmem:[#allocation3 + $0x4] sm:$0xf] %v1216_v26  ;;  %v3619_v31 = vpop.f32.mrb[3].mxu1 }
 0x264 PF: > { %v3897_v32 = vld [vmem:[%s5078_s7] sm:$0xff]   ;;  %v4522_v33 = vmov 0.0   ;;  %v3898_v34 = vld [vmem:[%s5078_s7 + $0x8] sm:$0xff]   ;;  %vm1239_vm1 = vcmask 1043456   ;;  %vm4523_vm2 = vmmov 0   ;;  %vm1235_vm3 = vcmask 64512  }
 0x265   : > { %3632 = vmatprep.subr.bf16.mxu0 %v4522_v33  ;;  %3620 = vmatprep.subr.bf16.mxu1 %v4522_v33  ;;  %v3900_v38 = vld [vmem:[%s5119_s15] sm:$0xff]   ;;  %v3899_v40 = vld [vmem:[%s5078_s7 + $0x10] sm:$0xff]   ;;  %v3904_v44 = vld [vmem:[%s5078_s7 + $0x28] sm:$0xff]   ;;  %s5605_s4 = scalar_lea.vmem [#allocation20], %s5067_s16  ;;  %s5606_s29 = sld [smem:[#allocation38_spill]]  ;;  %vm1479_vm4 = vcmask 130048  }
 0x266   : > { %3633 = vmatpush3.bf16.msra.mxu0 %v3897_v32  ;;  %3622 = vmatprep.mubr.msk.bf16.mxu1 %vm4523_vm2, %v4522_v33  ;;  %v3903_v41 = vld [vmem:[%s5124_s14] sm:$0xff]   ;;  %v3905_v45 = vld [vmem:[%s5078_s7 + $0x30] sm:$0xff]   ;;  %s5604_s14 = scalar_lea.vmem [#allocation12], %s5058_s18  ;;  %s4501_s15 = smov 0  }
 0x267   : > { %3634 = vmatprep.subr.bf16.mxu0 %v4522_v33  ;;  %3648 = vmatprep.mubr.msk.bf16.mxu0 %vm4523_vm2, %v4522_v33  ;;  %v3901_v42 = vld [vmem:[%s5078_s7 + $0x18] sm:$0xff]   ;;  %v3902_v43 = vld [vmem:[%s5078_s7 + $0x20] sm:$0xff]   ;;  %v1460_v5 = vld [vmem:[#allocation4] sm:$0xff] }
 0x268   : > { %1463 = vxpose.xlu0.c.b16.start.end [1/1] (short) (narrow) %v3903_v41, 16  ;;  %v3906_v46 = vld [vmem:[%s5078_s7 + $0x38] sm:$0xff]  }
 0x269   : > { %v1227_v35 = vld [vmem:[#allocation3] sm:$0xf]  ;;  %v3907_v47 = vld [vmem:[%s5604_s14] sm:$0xff]  }
 0x26a   : > { %v1229_v36 = vld [vmem:[#allocation3 + $0x4] sm:$0xf]  ;;  %v1293_v39 = vsel %vm1239_vm1, %v1227_v35, 0  ;;  %3635 = vmatpush3.bf16.msra.mxu0 %v3898_v34  ;;  %v3305_v59 = vld [vmem:[%s5605_s4] ss:$0 sm:$0xff] }
 0x26b   : > { %v1241_v37 = vsel %vm1239_vm1, %v1229_v36, 0  ;;  %3636 = vmatprep.subr.bf16.mxu0 %v4522_v33  ;;  %s3307_s24 = sshll.u32 %s5606_s29, 4 }
 0x26c   : > { %3621 = vmatpush3.bf16.msra.mxu1 %v1241_v37 }
 0x26d   : > { %3626 = vmatprep.subr.bf16.mxu1 %v4522_v33 }
 0x26e   : > { %3637 = vmatpush3.bf16.msra.mxu0 %v3899_v40 }
 0x26f   : > { %3623 = vmatmul.mubr.msk.bf16.vlgmr.msra.gmra.mrb[0].mxu1 %vm1235_vm3, %v3900_v38  ;;  %3638 = vmatprep.subr.bf16.mxu0 %v4522_v33 }
 0x270   : > { %3627 = vmatpush3.bf16.msra.mxu1 %v1293_v39  ;;  %3628 = vmatprep.mubr.msk.bf16.mxu1 %vm4523_vm2, %v4522_v33 }
 0x271   : > { %3652 = vmatprep.subr.bf16.mxu1 %v4522_v33 }
 0x272   : > { %3639 = vmatpush3.bf16.msra.mxu0 %v3901_v42 }
 0x273   : > { %3640 = vmatprep.subr.bf16.mxu0 %v4522_v33 }
 0x276   : > { %3641 = vmatpush3.bf16.msra.mxu0 %v3902_v43 }
 0x277   : > { %3629 = vmatmul.mubr.msk.bf16.vlgmr.msra.gmra.mrb[4].mxu1 %vm1235_vm3, %v3903_v41  ;;  %3642 = vmatprep.subr.bf16.mxu0 %v4522_v33 }
 0x278   : > { %3654 = vmatprep.mubr.msk.bf16.mxu1 %vm4523_vm2, %v4522_v33 }
 0x27a   : > { %3643 = vmatpush3.bf16.msra.mxu0 %v3904_v44 }
 0x27b   : > { %3644 = vmatprep.subr.bf16.mxu0 %v4522_v33 }
 0x27e   : > { %3645 = vmatpush3.bf16.msra.mxu0 %v3905_v45 }
 0x27f   : > { %3646 = vmatprep.subr.bf16.mxu0 %v4522_v33 }
 0x282   : > { %3647 = vmatpush3.bf16.msra.mxu0 %v3906_v46 }
 0x285   : > { %3649 = vmatmul.mubr.bf16.vlgmr.msra.gmra.mrb[0].mxu0 %v3907_v47 }
 0x2ce   : > { %v1471_v4 = vpop.trf.xlu0 }
 0x342   : > { %v1277_v48 = vpop.f32.mrb[0].mxu1 }
 0x343   : > { %v3624_v49 = vpop.f32.mrb[1].mxu1 }
 0x344   : > { %v1280_v50 = vpop.f32.mrb[2].mxu1 }
 0x345   : > { %v3625_v51 = vpop.f32.mrb[3].mxu1 }
 0x34a   : > { %v1329_v52 = vpop.f32.mrb[4].mxu1 }
 0x34b   : > { %v1330_v53 = vadd.f32 %v1329_v52, %v1277_v48  ;;  %v3630_v54 = vpop.f32.mrb[5].mxu1 }
 0x34c   : > { %v1332_v55 = vpop.f32.mrb[6].mxu1 }
 0x34d   : > { %v1333_v56 = vadd.f32 %v1332_v55, %v1280_v50  ;;  %v3631_v57 = vpop.f32.mrb[7].mxu1 }
 0x358   : > { %v1442_v58 = vpop.f32.mrb[0].mxu0 }
 0x359   : > { %v1449_v60 = vadd.f32 %v1442_v58, %v1330_v53  ;;  %v3650_v61 = vpop.f32.mrb[1].mxu0 }
 0x35a   : > { %v1445_v62 = vpop.f32.mrb[2].mxu0 }
 0x35b   : > { %v1458_v63 = vadd.f32 %v3305_v59, %v1449_v60  ;;  %v1450_v0 = vadd.f32 %v1445_v62, %v1333_v56  ;;  %v3651_v1 = vpop.f32.mrb[3].mxu0 }
 0x35d   : > { %1525 = vst [vmem:[#allocation8] sm:$0xff] %v1458_v63  ;;  %v1459_v2 = vadd.f32 %v3305_v59, %v1450_v0 }
 0x35f   : > { %v1461_v3 = vpack.c.bf16 %v1459_v2, %v1458_v63  ;;  %1526 = vst [vmem:[#allocation8 + $0x8] sm:$0xff] %v1459_v2 }
 0x361   : > { %3653 = vmatpush3.bf16.msra.mxu1 %v1461_v3 }
 0x364   : > { %3655 = vmatmul.mubr.msk.bf16.vlgmr.msra.gmra.mrb[8].mxu1 %vm1479_vm4, %v1471_v4 }
 0x437   : > { %v1517_v6 = vpop.f32.mrb[8].mxu1 }
 0x438   : > { %v1523_v7 = vadd.f32 %v1517_v6, %v1460_v5  ;;  %v3656_v8 = vpop.f32.mrb[9].mxu1 }
 0x439   : > { %v1520_v9 = vpop.f32.mrb[10].mxu1 }
 0x43a   : > { %1524 = vst [vmem:[#allocation4] sm:$0xff] %v1523_v7  ;;  %v3657_v10 = vpop.f32.mrb[11].mxu1 }
 0x43b LB: >> { %s1534_s18 = sadd.s32 %s4503_s15, %s3307_s24  ;;  %s4503_s15 = sphi %s4501_s15, %s1533_s15  }
 0x43c   : >> { %p3308_p6 = scmp.ge.s32.totalorder %s1534_s18, 24 }
 0x43d   : >> { %s1539_s23 = sld [smem:[#allocation11 + %s1534_s18]] (!%p3308_p6)  ;;  %s1540_s27 = scalar_lea.vmem (!%p3308_p6), [#allocation8], %s4503_s15 }
 0x43e   : >> { %1538 = sbr.rel (%p3308_p6) target bundleno = 1098 (0x44a), region = 147  ;;  %v1541_v11 = vld [vmem:[%s1540_s27] sm:$0x1] (!%p3308_p6) }
 0x43f   : >> { %v1544_v12 = vmul.f32 (!%p3308_p6), %v1541_v11, %v1541_v11 }
 0x443   : >> { %s1542_s8 = scalar_lea.vmem (!%p3308_p6), [#allocation5], %s1539_s23  ;;  %s1547_s7 = scalar_lea.vmem (!%p3308_p6), [#allocation6], %s1539_s23 }
 0x444   : >> { %v1543_v13 = vld [vmem:[%s1542_s8] sm:$0x1] (!%p3308_p6)  ;;  %s1551_s20 = scalar_lea.vmem (!%p3308_p6), [#allocation7], %s1539_s23 }
 0x445   : >> { %v1548_v14 = vld [vmem:[%s1547_s7] sm:$0x1]  ;;  %v1545_v15 = vadd.f32 %v1544_v12, %v1543_v13 }
 0x446   : >> { %v1549_v16 = vmin.f32 %v1548_v14, %v1541_v11  ;;  %v1552_v17 = vld [vmem:[%s1551_s20] sm:$0x1] }
 0x447   : >> { %v1553_v18 = vmax.f32 %v1552_v17, %v1541_v11  ;;  %1546 = vst [vmem:[%s1542_s8] sm:$0x1] %v1545_v15 }
 0x448   : >> { %1550 = vst [vmem:[%s1547_s7] sm:$0x1] %v1549_v16 }
 0x449   : >> { %1554 = vst [vmem:[%s1551_s20] sm:$0x1] %v1553_v18 }
 0x44a PF: >> { %s1533_s15 = sadd.s32 1, %s4503_s15  }
 0x44b   : >> { %p1530_p13 = scmp.ge.s32.totalorder %s1533_s15, 16  }
 0x44c   : > { %s5608_s19 = sld [smem:[#allocation38_spill]] (%p1530_p13) }
 0x44d   : > { %1532 = sbr.rel (!%p1530_p13) target bundleno = 1083 (0x43b), region = 269 }
 0x452   : > { %p1555_p2 = scmp.eq.s32.totalorder (%p1530_p13), %s5608_s19, 1  ;;  %p3309_p1 = scmp.ne.s32.totalorder (%p1530_p13), %s5608_s19, 1 }
 0x454   : > { %1558 = sbr.rel (%p3309_p1) target bundleno = 1824 (0x720), region = 151  ;;  %s5609_s9 = sld [smem:[#allocation53_spill]] (!%p3309_p1)  ;;  %v4524_v21 = vmov (!%p3309_p1), 0   ;;  %v3910_v22 = vld [vmem:[%s5092_s5 + $0x4] ss:$12 sps:$4 sm:$0xff] (!%p3309_p1)   ;;  %vm4526_vm10 = vmmov (!%p3309_p1), 0  }
 0x455   : > { %s5610_s21 = sld [smem:[#allocation56_spill]] (!%p3309_p1)  ;;  %3908 = vset.pattern.permute.xlu0 (!%p3309_p1), %v4524_v21  ;;  %v3912_v23 = vld [vmem:[%s5092_s5] ss:$12 sps:$4 sm:$0xff] (!%p3309_p1)   ;;  %3909 = vset.pattern.permute.xlu1 (!%p3309_p1), %v4524_v21  ;;  %v3913_v24 = vld [vmem:[%s5092_s5 + $0x1c] ss:$12 sps:$4 sm:$0xff] (!%p3309_p1)   ;;  %s5611_s12 = sld [smem:[#allocation54_spill]] (!%p3309_p1) }
 0x456   : > { %2423 = vmatprep.subr.bf16.mxu0 (!%p3309_p1), %v3910_v22  ;;  %v3915_v26 = vld [vmem:[%s5092_s5 + $0x18] ss:$12 sps:$4 sm:$0xff] (!%p3309_p1)   ;;  %v3916_v27 = vld [vmem:[%s5092_s5 + $0x34] ss:$12 sps:$4 sm:$0xff] (!%p3309_p1)   ;;  %v3918_v28 = vld [vmem:[%s5092_s5 + $0x30] ss:$12 sps:$4 sm:$0xff] (!%p3309_p1)  }
 0x457   : > { %2424 = vmatpush1.bf16.msra.mxu0 (!%p3309_p1), %v3912_v23  ;;  %v3925_v29 = vld [vmem:[%s5092_s5 + $0x184] ss:$12 sps:$4 sm:$0xff] (!%p3309_p1)   ;;  %v3919_v30 = vld [vmem:[%s5092_s5 + $0x4c] ss:$12 sps:$4 sm:$0xff] (!%p3309_p1)   ;;  %v3931_v32 = vld [vmem:[%s5092_s5 + $0x19c] ss:$12 sps:$4 sm:$0xff] (!%p3309_p1)  }
 0x458   : > { %2425 = vmatprep.subr.bf16.mxu0 (!%p3309_p1), %v3913_v24  ;;  %v3929_v31 = vld [vmem:[%s5092_s5 + $0x180] ss:$12 sps:$4 sm:$0xff] (!%p3309_p1)   ;;  %2464 = vmatprep.subr.bf16.mxu1 (!%p3309_p1), %v3925_v29  ;;  %v3921_v33 = vld [vmem:[%s5092_s5 + $0x48] ss:$12 sps:$4 sm:$0xff] (!%p3309_p1)   ;;  %v3922_v34 = vld [vmem:[%s5092_s5 + $0x64] ss:$12 sps:$4 sm:$0xff] (!%p3309_p1)  }
 0x459   : > { %2465 = vmatpush1.bf16.msra.mxu1 (!%p3309_p1), %v3929_v31  ;;  %v3935_v35 = vld [vmem:[%s5092_s5 + $0x198] ss:$12 sps:$4 sm:$0xff] (!%p3309_p1)   ;;  %v3937_v36 = vld [vmem:[%s5092_s5 + $0x1b4] ss:$12 sps:$4 sm:$0xff] (!%p3309_p1)   ;;  %v3941_v38 = vld [vmem:[%s5092_s5 + $0x1b0] ss:$12 sps:$4 sm:$0xff] (!%p3309_p1)  }
 0x45a   : > { %v1559_v19 = vld [vmem:[%s5609_s9] sm:$0xff] (!%p3309_p1)  ;;  %2466 = vmatprep.subr.bf16.mxu1 (!%p3309_p1), %v3931_v32  ;;  %v3947_v41 = vld [vmem:[%s5092_s5 + $0x1c8] ss:$12 sps:$4 sm:$0xff] (!%p3309_p1)   ;;  %v3949_v43 = vld [vmem:[%s5092_s5 + $0x1e4] ss:$12 sps:$4 sm:$0xff] (!%p3309_p1)   ;;  %s5612_s4 = sld [smem:[#allocation55_spill]] (!%p3309_p1) }
 0x45b   : > { %v1560_v20 = vld [vmem:[%s5610_s21] sm:$0xff]  ;;  %1565 = vperm.xlu0 %3908, %v1559_v19   ;;  %2426 = vmatpush1.bf16.msra.mxu0 %v3915_v26  ;;  %v5215_v49 = vld [vmem:[#allocation4] sm:$0xff]  ;;  %s5616_s29 = sld [smem:[#allocation65_spill]] }
 0x45c   : > { %vm1561_vm5 = vcmp.gt.f32.partialorder %v1560_v20, 0.5  ;;  %2427 = vmatprep.subr.bf16.mxu0 %v3916_v27  ;;  %v3924_v37 = vld [vmem:[%s5092_s5 + $0x60] ss:$12 sps:$4 sm:$0xff]   ;;  %v3927_v40 = vld [vmem:[%s5092_s5 + $0x7c] ss:$12 sps:$4 sm:$0xff]   ;;  %v1599_v51 = vpack.c.bf16 %v5215_v49, %v5215_v49 }
 0x45d   : > { %v1583_v25 = vsel %vm1561_vm5, 1, %v4524_v21  ;;  %2467 = vmatpush1.bf16.msra.mxu1 %v3935_v35  ;;  %v3943_v39 = vld [vmem:[%s5092_s5 + $0x1cc] ss:$12 sps:$4 sm:$0xff]   ;;  %v3933_v44 = vld [vmem:[%s5092_s5 + $0x94] ss:$12 sps:$4 sm:$0xff]  }
 0x45e   : > { %2468 = vmatprep.subr.bf16.mxu1 %v3937_v36  ;;  %v3930_v42 = vld [vmem:[%s5092_s5 + $0x78] ss:$12 sps:$4 sm:$0xff]   ;;  %v3936_v45 = vld [vmem:[%s5092_s5 + $0x90] ss:$12 sps:$4 sm:$0xff]   ;;  %v3953_v46 = vld [vmem:[%s5092_s5 + $0x1e0] ss:$12 sps:$4 sm:$0xff]  }
 0x45f   : > { %1585 = vperm.xlu0 %3908, %v1583_v25   ;;  %2428 = vmatpush1.bf16.msra.mxu0 %v3918_v28  ;;  %v3955_v47 = vld [vmem:[%s5092_s5 + $0x1fc] ss:$12 sps:$4 sm:$0xff]   ;;  %v3939_v48 = vld [vmem:[%s5092_s5 + $0xac] ss:$12 sps:$4 sm:$0xff]   ;;  %v3961_v53 = vld [vmem:[%s5092_s5 + $0x214] ss:$12 sps:$4 sm:$0xff]  }
 0x460   : > { %2429 = vmatprep.subr.bf16.mxu0 %v3919_v30  ;;  %v3959_v50 = vld [vmem:[%s5092_s5 + $0x1f8] ss:$12 sps:$4 sm:$0xff]   ;;  %v3942_v52 = vld [vmem:[%s5092_s5 + $0xa8] ss:$12 sps:$4 sm:$0xff]   ;;  %1600 = vst [vmem:[#allocation9 + $0x10] sm:$0xf] %v1599_v51 }
 0x461   : > { %2469 = vmatpush1.bf16.msra.mxu1 %v3941_v38  ;;  %v3945_v54 = vld [vmem:[%s5092_s5 + $0xc4] ss:$12 sps:$4 sm:$0xff]   ;;  %v3948_v56 = vld [vmem:[%s5092_s5 + $0xc0] ss:$12 sps:$4 sm:$0xff]   ;;  %v3951_v58 = vld [vmem:[%s5092_s5 + $0xdc] ss:$12 sps:$4 sm:$0xff]   ;;  %s5617_s24 = scalar_lea.vmem %s5616_s29, %s5641_s6 }
 0x462   : > { %2470 = vmatprep.subr.bf16.mxu1 %v3943_v39  ;;  %v3965_v55 = vld [vmem:[%s5092_s5 + $0x210] ss:$12 sps:$4 sm:$0xff]   ;;  %v3967_v57 = vld [vmem:[%s5092_s5 + $0x22c] ss:$12 sps:$4 sm:$0xff]   ;;  %v3971_v60 = vld [vmem:[%s5092_s5 + $0x228] ss:$12 sps:$4 sm:$0xff]  }
 0x463   : > { %2430 = vmatpush1.bf16.msra.mxu0 %v3921_v33  ;;  %v3954_v59 = vld [vmem:[%s5092_s5 + $0xd8] ss:$12 sps:$4 sm:$0xff]   ;;  %v3957_v62 = vld [vmem:[%s5092_s5 + $0xf4] ss:$12 sps:$4 sm:$0xff]   ;;  %v3960_v0 = vld [vmem:[%s5092_s5 + $0xf0] ss:$12 sps:$4 sm:$0xff]  }
 0x464   : > { %2431 = vmatprep.subr.bf16.mxu0 %v3922_v34  ;;  %v3973_v61 = vld [vmem:[%s5092_s5 + $0x244] ss:$12 sps:$4 sm:$0xff]   ;;  %v3977_v63 = vld [vmem:[%s5092_s5 + $0x240] ss:$12 sps:$4 sm:$0xff]   ;;  %v3979_v1 = vld [vmem:[%s5092_s5 + $0x25c] ss:$12 sps:$4 sm:$0xff]  }
 0x465   : > { %2471 = vmatpush1.bf16.msra.mxu1 %v3947_v41  ;;  %v3963_v2 = vld [vmem:[%s5092_s5 + $0x10c] ss:$12 sps:$4 sm:$0xff]   ;;  %v3966_v4 = vld [vmem:[%s5092_s5 + $0x108] ss:$12 sps:$4 sm:$0xff]   ;;  %v3969_v6 = vld [vmem:[%s5092_s5 + $0x124] ss:$12 sps:$4 sm:$0xff]  }
 0x466   : > { %2472 = vmatprep.subr.bf16.mxu1 %v3949_v43  ;;  %v3983_v3 = vld [vmem:[%s5092_s5 + $0x258] ss:$12 sps:$4 sm:$0xff]   ;;  %v3985_v5 = vld [vmem:[%s5092_s5 + $0x274] ss:$12 sps:$4 sm:$0xff]   ;;  %v3989_v7 = vld [vmem:[%s5092_s5 + $0x270] ss:$12 sps:$4 sm:$0xff]  }
 0x467   : > { %2432 = vmatpush1.bf16.msra.mxu0 %v3924_v37  ;;  %v3972_v8 = vld [vmem:[%s5092_s5 + $0x120] ss:$12 sps:$4 sm:$0xff]   ;;  %v3975_v10 = vld [vmem:[%s5092_s5 + $0x13c] ss:$12 sps:$4 sm:$0xff]   ;;  %v3978_v11 = vld [vmem:[%s5092_s5 + $0x138] ss:$12 sps:$4 sm:$0xff]  }
 0x468   : > { %2433 = vmatprep.subr.bf16.mxu0 %v3927_v40  ;;  %v3991_v9 = vld [vmem:[%s5092_s5 + $0x28c] ss:$12 sps:$4 sm:$0xff]   ;;  %v3993_v12 = vld [vmem:[%s5092_s5 + $0x288] ss:$12 sps:$4 sm:$0xff]   ;;  %v3997_v13 = vld [vmem:[%s5092_s5 + $0x2a4] ss:$12 sps:$4 sm:$0xff]  }
 0x469   : > { %2473 = vmatpush1.bf16.msra.mxu1 %v3953_v46  ;;  %v3981_v14 = vld [vmem:[%s5092_s5 + $0x154] ss:$12 sps:$4 sm:$0xff]   ;;  %v3984_v16 = vld [vmem:[%s5092_s5 + $0x150] ss:$12 sps:$4 sm:$0xff]   ;;  %v3987_v18 = vld [vmem:[%s5092_s5 + $0x16c] ss:$12 sps:$4 sm:$0xff]  }
 0x46a   : > { %2474 = vmatprep.subr.bf16.mxu1 %v3955_v47  ;;  %v3999_v15 = vld [vmem:[%s5092_s5 + $0x2a0] ss:$12 sps:$4 sm:$0xff]   ;;  %v4003_v17 = vld [vmem:[%s5092_s5 + $0x2bc] ss:$12 sps:$4 sm:$0xff]   ;;  %v4005_v20 = vld [vmem:[%s5092_s5 + $0x2b8] ss:$12 sps:$4 sm:$0xff]  }
 0x46b   : > { %2434 = vmatpush1.bf16.msra.mxu0 %v3930_v42  ;;  %v3990_v19 = vld [vmem:[%s5092_s5 + $0x168] ss:$12 sps:$4 sm:$0xff]   ;;  %v3996_v23 = vld [vmem:[%s5092_s5 + $0x304] ss:$12 sps:$4 sm:$0xff]   ;;  %v4015_v25 = vld [vmem:[%s5092_s5 + $0x2ec] ss:$12 sps:$4 sm:$0xff]  }
 0x46c   : > { %2435 = vmatprep.subr.bf16.mxu0 %v3933_v44  ;;  %v4009_v22 = vld [vmem:[%s5092_s5 + $0x2d4] ss:$12 sps:$4 sm:$0xff]   ;;  %v4011_v24 = vld [vmem:[%s5092_s5 + $0x2d0] ss:$12 sps:$4 sm:$0xff]  }
 0x46d   : > { %2475 = vmatpush1.bf16.msra.mxu1 %v3959_v50  ;;  %v4017_v26 = vld [vmem:[%s5092_s5 + $0x2e8] ss:$12 sps:$4 sm:$0xff]   ;;  %v2771_v28 = vld [vmem:[%s5611_s12] sm:$0xff] }
 0x46e   : > { %2476 = vmatprep.subr.bf16.mxu1 %v3961_v53  ;;  %v4021_v27 = vld [vmem:[%s5092_s5 + $0xc8] ss:$12 sps:$4 sm:$0xff]   ;;  %2774 = vperm.xlu1 %3909, %v2771_v28   ;;  %v2779_v29 = vld [vmem:[%s5612_s4] sm:$0xff]  ;;  %v4020_v53 = vld [vmem:[%s5092_s5 + $0x364] ss:$12 sps:$4 sm:$0xff]  }
 0x46f   : > { %2436 = vmatpush1.bf16.msra.mxu0 %v3936_v45  ;;  %v1569_v30 = vld [vmem:[#allocation5] sm:$0xff]  ;;  %v1582_v35 = vld [vmem:[#allocation6] sm:$0xff] }
 0x470   : > { %2437 = vmatprep.subr.bf16.mxu0 %v3939_v48  ;;  %v3994_v41 = vld [vmem:[%s5092_s5 + $0x300] ss:$12 sps:$4 sm:$0xff]   ;;  %v4002_v42 = vld [vmem:[%s5092_s5 + $0x31c] ss:$12 sps:$4 sm:$0xff]   ;;  %v4094_v44 = vpack.c.bf16 %v1582_v35, %v1582_v35  ;;  %v4000_v45 = vld [vmem:[%s5092_s5 + $0x318] ss:$12 sps:$4 sm:$0xff]  }
 0x471   : > { %2477 = vmatpush1.bf16.msra.mxu1 %v3965_v55  ;;  %v4008_v46 = vld [vmem:[%s5092_s5 + $0x334] ss:$12 sps:$4 sm:$0xff]   ;;  %v4006_v47 = vld [vmem:[%s5092_s5 + $0x330] ss:$12 sps:$4 sm:$0xff]   ;;  %v4014_v48 = vld [vmem:[%s5092_s5 + $0x34c] ss:$12 sps:$4 sm:$0xff]  }
 0x472   : > { %2478 = vmatprep.subr.bf16.mxu1 %v3967_v57  ;;  %2782 = vperm.xlu1 %3909, %v2779_v29   ;;  %v4012_v50 = vld [vmem:[%s5092_s5 + $0x348] ss:$12 sps:$4 sm:$0xff]   ;;  %v4057_v28 = vld [vmem:[%s5092_s5 + $0x2c0] ss:$12 sps:$4 sm:$0xff]   ;;  %v4063_v35 = vld [vmem:[%s5092_s5 + $0x2f0] ss:$12 sps:$4 sm:$0xff]  }
 0x473   : > { %2438 = vmatpush1.bf16.msra.mxu0 %v3942_v52  ;;  %v1589_v52 = vld [vmem:[#allocation7] sm:$0xff]  ;;  %v4071_v43 = vld [vmem:[%s5085_s11 + $0x10] sm:$0xff]  }
 0x474   : > { %2439 = vmatprep.subr.bf16.mxu0 %v3945_v54  ;;  %v4024_v57 = vld [vmem:[%s5092_s5 + $0x37c] ss:$12 sps:$4 sm:$0xff]  }
 0x475   : > { %2479 = vmatpush1.bf16.msra.mxu1 %v3971_v60  ;;  %v4022_v60 = vld [vmem:[%s5092_s5 + $0x378] ss:$12 sps:$4 sm:$0xff]   ;;  %v4058_v29 = vld [vmem:[%s5092_s5 + $0x308] ss:$12 sps:$4 sm:$0xff]  }
 0x476   : > { %2480 = vmatprep.subr.bf16.mxu1 %v3973_v61  ;;  %v4026_v61 = vld [vmem:[%s5092_s5 + $0xe0] ss:$12 sps:$4 sm:$0xff]  }
 0x477   : > { %2440 = vmatpush1.bf16.msra.mxu0 %v3948_v56  ;;  %v4018_v56 = vld [vmem:[%s5092_s5 + $0x360] ss:$12 sps:$4 sm:$0xff]  }
 0x478   : > { %2441 = vmatprep.subr.bf16.mxu0 %v3951_v58 }
 0x479   : > { %2481 = vmatpush1.bf16.msra.mxu1 %v3977_v63  ;;  %v5290_v63 = vpack.c.bf16 %v1589_v52, %v1589_v52 }
 0x47a   : > { %2482 = vmatprep.subr.bf16.mxu1 %v3979_v1  ;;  %v4027_v1 = vld [vmem:[%s5092_s5 + $0x390] ss:$12 sps:$4 sm:$0xff]  }
 0x47b   : > { %2442 = vmatpush1.bf16.msra.mxu0 %v3954_v59  ;;  %v4025_v59 = vld [vmem:[%s5092_s5 + $0x8] ss:$12 sps:$4 sm:$0xff]  }
 0x47c   : > { %2443 = vmatprep.subr.bf16.mxu0 %v3957_v62  ;;  %v4029_v62 = vld [vmem:[%s5092_s5 + $0x394] ss:$12 sps:$4 sm:$0xff]  }
 0x47d   : > { %2483 = vmatpush1.bf16.msra.mxu1 %v3983_v3  ;;  %v4034_v3 = vld [vmem:[%s5092_s5 + $0x3ac] ss:$12 sps:$4 sm:$0xff]  }
 0x47e   : > { %2484 = vmatprep.subr.bf16.mxu1 %v3985_v5  ;;  %v4032_v5 = vld [vmem:[%s5092_s5 + $0x3a8] ss:$12 sps:$4 sm:$0xff]  }
 0x47f   : > { %2444 = vmatpush1.bf16.msra.mxu0 %v3960_v0  ;;  %v4030_v0 = vld [vmem:[%s5092_s5 + $0x20] ss:$12 sps:$4 sm:$0xff]  }
 0x480   : > { %2445 = vmatprep.subr.bf16.mxu0 %v3963_v2  ;;  %v4031_v2 = vld [vmem:[%s5092_s5 + $0xf8] ss:$12 sps:$4 sm:$0xff]  }
 0x481   : > { %2485 = vmatpush1.bf16.msra.mxu1 %v3989_v7  ;;  %v4039_v7 = vld [vmem:[%s5092_s5 + $0x248] ss:$12 sps:$4 sm:$0xff]  }
 0x482   : > { %2486 = vmatprep.subr.bf16.mxu1 %v3991_v9  ;;  %v4038_v9 = vld [vmem:[%s5092_s5 + $0x50] ss:$12 sps:$4 sm:$0xff]  }
 0x483   : > { %2446 = vmatpush1.bf16.msra.mxu0 %v3966_v4  ;;  %v4035_v4 = vld [vmem:[%s5092_s5 + $0x38] ss:$12 sps:$4 sm:$0xff]  }
 0x484   : > { %2447 = vmatprep.subr.bf16.mxu0 %v3969_v6  ;;  %v4036_v6 = vld [vmem:[%s5092_s5 + $0x110] ss:$12 sps:$4 sm:$0xff]  }
 0x485   : > { %2487 = vmatpush1.bf16.msra.mxu1 %v3993_v12  ;;  %v4043_v12 = vld [vmem:[%s5092_s5 + $0x260] ss:$12 sps:$4 sm:$0xff]  }
 0x486   : > { %2488 = vmatprep.subr.bf16.mxu1 %v3997_v13  ;;  %v4042_v13 = vld [vmem:[%s5092_s5 + $0x68] ss:$12 sps:$4 sm:$0xff]  }
 0x487   : > { %2448 = vmatpush1.bf16.msra.mxu0 %v3972_v8  ;;  %v5305_v8 = vld [vmem:[#allocation9 + $0x10] ss:$0 sps:$4 sm:$0xff]  }
 0x488   : > { %2449 = vmatprep.subr.bf16.mxu0 %v3975_v10  ;;  %v4040_v10 = vld [vmem:[%s5092_s5 + $0x188] ss:$12 sps:$4 sm:$0xff]  }
 0x489   : > { %2489 = vmatpush1.bf16.msra.mxu1 %v3999_v15  ;;  %v4045_v15 = vld [vmem:[%s5092_s5 + $0x140] ss:$12 sps:$4 sm:$0xff]  }
 0x48a   : > { %2490 = vmatprep.subr.bf16.mxu1 %v4003_v17  ;;  %v4046_v17 = vld [vmem:[%s5092_s5 + $0x80] ss:$12 sps:$4 sm:$0xff]  }
 0x48b   : > { %2450 = vmatpush1.bf16.msra.mxu0 %v3978_v11  ;;  %v4041_v11 = vld [vmem:[%s5092_s5 + $0x128] ss:$12 sps:$4 sm:$0xff]  }
 0x48c   : > { %2451 = vmatprep.subr.bf16.mxu0 %v3981_v14  ;;  %v4044_v14 = vld [vmem:[%s5092_s5 + $0x1a0] ss:$12 sps:$4 sm:$0xff]  }
 0x48d   : > { %2491 = vmatpush1.bf16.msra.mxu1 %v4005_v20  ;;  %v4051_v20 = vld [vmem:[%s5092_s5 + $0x290] ss:$12 sps:$4 sm:$0xff]  }
 0x48e   : > { %2492 = vmatprep.subr.bf16.mxu1 %v4009_v22  ;;  %v4050_v22 = vld [vmem:[%s5092_s5 + $0x98] ss:$12 sps:$4 sm:$0xff]  }
 0x48f   : > { %2452 = vmatpush1.bf16.msra.mxu0 %v3984_v16  ;;  %v4047_v16 = vld [vmem:[%s5092_s5 + $0x278] ss:$12 sps:$4 sm:$0xff]  }
 0x490   : > { %2453 = vmatprep.subr.bf16.mxu0 %v3987_v18  ;;  %v4048_v18 = vld [vmem:[%s5092_s5 + $0x1b8] ss:$12 sps:$4 sm:$0xff]  }
 0x491   : > { %2493 = vmatpush1.bf16.msra.mxu1 %v4011_v24  ;;  %v4053_v24 = vld [vmem:[%s5092_s5 + $0x170] ss:$12 sps:$4 sm:$0xff]  }
 0x492   : > { %2494 = vmatprep.subr.bf16.mxu1 %v4015_v25  ;;  %v4055_v25 = vld [vmem:[%s5092_s5 + $0x2a8] ss:$12 sps:$4 sm:$0xff]  }
 0x493   : > { %2454 = vmatpush1.bf16.msra.mxu0 %v3990_v19  ;;  %v4049_v19 = vld [vmem:[%s5092_s5 + $0x158] ss:$12 sps:$4 sm:$0xff]  }
 0x494   : > { %2505 = vmatprep.subr.bf16.mxu0 %v3996_v23  ;;  %v4052_v23 = vld [vmem:[%s5092_s5 + $0x1d0] ss:$12 sps:$4 sm:$0xff]  }
 0x495   : > { %2495 = vmatpush1.bf16.msra.mxu1 %v4017_v26  ;;  %v4054_v26 = vld [vmem:[%s5092_s5 + $0xb0] ss:$12 sps:$4 sm:$0xff]  }
 0x496   : > { %3509 = vmatprep.subr.bf16.mxu1 %v4021_v27  ;;  %v4056_v27 = vld [vmem:[%s5092_s5 + $0x1e8] ss:$12 sps:$4 sm:$0xff]  }
 0x4da   : > { %v1566_v31 = vpop.permute.xlu0 %1565 }
 0x4db   : > { %v1568_v32 = vmul.f32 %v1566_v31, %v5215_v49  ;;  %v1570_v33 = vmul.f32 %v1569_v30, %v1566_v31  ;;  %v4525_v30 = vmov 0.0   ;;  %v4059_v31 = vld [vmem:[%s5092_s5 + $0x200] ss:$12 sps:$4 sm:$0xff]  }
 0x4dd   : > { %v1571_v34 = vmul.f32 %v1568_v32, %v1568_v32  ;;  %v5266_v40 = vpack.c.bf16 %v1568_v32, %v1568_v32  ;;  %v4060_v32 = vld [vmem:[%s5092_s5 + $0x2d8] ss:$12 sps:$4 sm:$0xff]  }
 0x4de   : > { %v1586_v36 = vpop.permute.xlu0 %1585 }
 0x4df   : > { %v1572_v37 = vsub.f32 %v1570_v33, %v1571_v34  ;;  %vm1587_vm6 = vcmp.eq.s32.totalorder %v1586_v36, 1  ;;  %v4061_v33 = vld [vmem:[%s5092_s5 + $0x320] ss:$12 sps:$4 sm:$0xff]   ;;  %v4062_v34 = vld [vmem:[%s5092_s5 + $0x218] ss:$12 sps:$4 sm:$0xff]  }
 0x4e0   : > { %vm5270_vm7 = vmpackc.low %vm1587_vm6, %vm1587_vm6  ;;  %v4064_v36 = vld [vmem:[%s5092_s5 + $0x338] ss:$12 sps:$4 sm:$0xff]  }
 0x4e1   : > { %v1573_v38 = vmax.f32 %v1572_v37, 0.0  ;;  %4095 = vmatprep.mubr.msk.bf16.mxu0 %vm5270_vm7, %v4094_v44  ;;  %v4065_v37 = vld [vmem:[%s5092_s5 + $0x230] ss:$12 sps:$4 sm:$0xff]  }
 0x4e2   : > { %2456 = vmatmul.mubr.bf16.vlgmr.msra.gmra.mrb[0].mxu0 %v5266_v40 }
 0x4e3   : > { %v1574_v39 = vadd.f32 1e-05, %v1573_v38  ;;  %2506 = vmatpush1.bf16.msra.mxu0 %v3994_v41  ;;  %2537 = vmatprep.mubr.bf16.mxu0 %v4524_v21  ;;  %v4066_v38 = vld [vmem:[%s5092_s5 + $0x350] ss:$12 sps:$4 sm:$0xff]   ;;  %v4069_v41 = vld [vmem:[%s5085_s11 + $0x8] sm:$0xff]  }
 0x4e4   : > { %2507 = vmatprep.subr.bf16.mxu0 %v4002_v42  ;;  %v4070_v42 = vld [vmem:[%s5092_s5 + $0x380] ss:$12 sps:$4 sm:$0xff]  }
 0x4e5   : > { %4087 = vrsqrt.f32 %v1574_v39  ;;  %vm1577_vm8 = vcmp.eq.f32.partialorder %v1574_v39, inf  ;;  %v1580_v21 = vand.u32 2147483648, %v1574_v39  ;;  %vm1579_vm9 = vcmp.eq.f32.partialorder %v1574_v39, 0.0 }
 0x4e7   : > { %2508 = vmatpush1.bf16.msra.mxu0 %v4000_v45  ;;  %v4073_v45 = vld [vmem:[%s5085_s11 + $0x18] sm:$0xff]  }
 0x4e8   : > { %2509 = vmatprep.subr.bf16.mxu0 %v4008_v46  ;;  %v4074_v46 = vld [vmem:[%s5092_s5 + $0x3b0] ss:$12 sps:$4 sm:$0xff]  }
 0x4eb   : > { %2510 = vmatpush1.bf16.msra.mxu0 %v4006_v47  ;;  %v4075_v47 = vld [vmem:[%s5085_s11 + $0x20] sm:$0xff]  }
 0x4ec   : > { %2511 = vmatprep.subr.bf16.mxu0 %v4014_v48  ;;  %v4076_v48 = vld [vmem:[%s5085_s11 + $0x28] sm:$0xff]  }
 0x4ef   : > { %v4088_v49 = vpop.eup %4087  ;;  %2512 = vmatpush1.bf16.msra.mxu0 %v4012_v50  ;;  %v4078_v50 = vld [vmem:[%s5085_s11 + $0x38] sm:$0xff]  }
 0x4f0   : > { %v1576_v51 = vmul.f32 %v4088_v49, %v1574_v39  ;;  %2513 = vmatprep.subr.bf16.mxu0 %v4020_v53  ;;  %v4077_v49 = vld [vmem:[%s5085_s11 + $0x30] sm:$0xff]   ;;  %v4079_v53 = vld [vmem:[%s5114_s13] sm:$0xff]  }
 0x4f2   : > { %v1578_v54 = vsel %vm1577_vm8, %v1574_v39, %v1576_v51  ;;  %v4067_v39 = vld [vmem:[%s5085_s11] sm:$0xff]  }
 0x4f3   : > { %v1581_v55 = vsel %vm1579_vm9, %v1580_v21, %v1578_v54  ;;  %2514 = vmatpush1.bf16.msra.mxu0 %v4018_v56  ;;  %v1601_v51 = vld [vmem:[#allocation2] sm:$0xff]  ;;  %v4080_v21 = vld [vmem:[%s5114_s13 + $0x8] sm:$0xff]   ;;  %v4081_v54 = vld [vmem:[%s5114_s13 + $0x10] sm:$0xff]  }
 0x4f4   : > { %v4097_v58 = vpack.c.bf16 %v1581_v55, %v1581_v55  ;;  %2515 = vmatprep.subr.bf16.mxu0 %v4024_v57  ;;  %v2682_v52 = vpack.c.bf16 %v1601_v51, %v1601_v51  ;;  %v4082_v55 = vld [vmem:[%s5114_s13 + $0x18] sm:$0xff]   ;;  %v4083_v56 = vld [vmem:[%s5114_s13 + $0x20] sm:$0xff]   ;;  %v4084_v57 = vld [vmem:[%s5114_s13 + $0x28] sm:$0xff]  }
 0x4f6   : > { %2496 = vmatprep.mubr.bf16.mxu1 %v4097_v58 }
 0x4f7   : > { %4100 = vmatmul.mubr.msk.bf16.vlgmr.msra.gmra.mrb[0].mxu1 %vm5270_vm7, %v5290_v63  ;;  %2516 = vmatpush1.bf16.msra.mxu0 %v4022_v60 }
 0x4f8   : > { %3510 = vmatpush3.bf16.msra.mxu1 %v4025_v59  ;;  %4103 = vmatprep.mubr.msk.bf16.mxu1 %vm5270_vm7, %v4094_v44  ;;  %v4072_v44 = vld [vmem:[%s5092_s5 + $0x398] ss:$12 sps:$4 sm:$0xff]  }
 0x4f9   : > { %3511 = vmatprep.subr.bf16.mxu1 %v4026_v61  ;;  %2517 = vmatprep.subr.bf16.mxu0 %v4029_v62  ;;  %v4086_v59 = vld [vmem:[%s5114_s13 + $0x38] sm:$0xff]  }
 0x4fb   : > { %2518 = vmatpush1.bf16.msra.mxu0 %v4027_v1 }
 0x4fc   : > { %3512 = vmatpush3.bf16.msra.mxu1 %v4030_v0  ;;  %2519 = vmatprep.subr.bf16.mxu0 %v4034_v3 }
 0x4fd   : > { %3513 = vmatprep.subr.bf16.mxu1 %v4031_v2 }
 0x4ff   : > { %2520 = vmatpush1.bf16.msra.mxu0 %v4032_v5 }
 0x500   : > { %3514 = vmatpush3.bf16.msra.mxu1 %v4035_v4  ;;  %3531 = vmatprep.subr.bf16.mxu0 %v4039_v7 }
 0x501   : > { %3515 = vmatprep.subr.bf16.mxu1 %v4036_v6 }
 0x502   : > { %2538 = vmatmul.mubr.bf16.vlgmr.msra.gmra.mrb[4].mxu0 %v5305_v8 }
 0x503   : > { %3532 = vmatpush3.bf16.msra.mxu0 %v4040_v10  ;;  %2618 = vmatprep.mubr.bf16.mxu0 %v4097_v58  ;;  %v4085_v58 = vld [vmem:[%s5114_s13 + $0x30] sm:$0xff]   ;;  %s5615_s13 = scalar_lea.vmem [#allocation24], %s5067_s16 }
 0x504   : > { %3516 = vmatpush3.bf16.msra.mxu1 %v4038_v9  ;;  %3533 = vmatprep.subr.bf16.mxu0 %v4043_v12 }
 0x505   : > { %3517 = vmatprep.subr.bf16.mxu1 %v4041_v11 }
 0x507   : > { %3534 = vmatpush3.bf16.msra.mxu0 %v4044_v14 }
 0x508   : > { %3518 = vmatpush3.bf16.msra.mxu1 %v4042_v13  ;;  %3535 = vmatprep.subr.bf16.mxu0 %v4047_v16 }
 0x509   : > { %3519 = vmatprep.subr.bf16.mxu1 %v4045_v15 }
 0x50b   : > { %3536 = vmatpush3.bf16.msra.mxu0 %v4048_v18 }
 0x50c   : > { %3520 = vmatpush3.bf16.msra.mxu1 %v4046_v17  ;;  %3537 = vmatprep.subr.bf16.mxu0 %v4051_v20 }
 0x50d   : > { %3521 = vmatprep.subr.bf16.mxu1 %v4049_v19 }
 0x50f   : > { %3538 = vmatpush3.bf16.msra.mxu0 %v4052_v23 }
 0x510   : > { %3522 = vmatpush3.bf16.msra.mxu1 %v4050_v22  ;;  %3539 = vmatprep.subr.bf16.mxu0 %v4055_v25 }
 0x511   : > { %3523 = vmatprep.subr.bf16.mxu1 %v4053_v24 }
 0x513   : > { %3540 = vmatpush3.bf16.msra.mxu0 %v4056_v27 }
 0x514   : > { %3524 = vmatpush3.bf16.msra.mxu1 %v4054_v26  ;;  %3541 = vmatprep.subr.bf16.mxu0 %v4057_v28 }
 0x515   : > { %3658 = vmatprep.subr.bf16.mxu1 %v4525_v30 }
 0x517   : > { %2579 = vmatmul.mubr.bf16.vlgmr.msra.gmra.mrb[4].mxu1 %v5266_v40  ;;  %3542 = vmatpush3.bf16.msra.mxu0 %v4059_v31  ;;  %v4068_v40 = vld [vmem:[%s5092_s5 + $0x368] ss:$12 sps:$4 sm:$0xff]  }
 0x518   : > { %3659 = vmatpush3.bf16.msra.mxu1 %v4058_v29  ;;  %3674 = vmatprep.mubr.msk.bf16.mxu1 %vm4526_vm10, %v4525_v30  ;;  %v2775_v29 = vpop.permute.xlu1 %2774 }
 0x519   : > { %3660 = vmatprep.subr.bf16.mxu1 %v4525_v30  ;;  %3543 = vmatprep.subr.bf16.mxu0 %v4060_v32 }
 0x51b   : > { %3544 = vmatpush3.bf16.msra.mxu0 %v4062_v34 }
 0x51c   : > { %3661 = vmatpush3.bf16.msra.mxu1 %v4061_v33  ;;  %3545 = vmatprep.subr.bf16.mxu0 %v4063_v35 }
 0x51d   : > { %3662 = vmatprep.subr.bf16.mxu1 %v4525_v30 }
 0x51f   : > { %3546 = vmatpush3.bf16.msra.mxu0 %v4065_v37 }
 0x520   : > { %3663 = vmatpush3.bf16.msra.mxu1 %v4064_v36  ;;  %3678 = vmatprep.subr.bf16.mxu0 %v4525_v30 }
 0x521   : > { %3664 = vmatprep.subr.bf16.mxu1 %v4525_v30 }
 0x522   : > { %4106 = vmatmul.mubr.msk.bf16.vlgmr.msra.gmra.mrb[8].mxu0 %vm5270_vm7, %v5290_v63 }
 0x523   : > { %3679 = vmatpush3.bf16.msra.mxu0 %v4067_v39  ;;  %3694 = vmatprep.mubr.msk.bf16.mxu0 %vm4526_vm10, %v4525_v30  ;;  %v3443_v39 = vld [vmem:[%s5615_s13] ss:$0 sm:$0xff] }
 0x524   : > { %3665 = vmatpush3.bf16.msra.mxu1 %v4066_v38  ;;  %3680 = vmatprep.subr.bf16.mxu0 %v4525_v30 }
 0x525   : > { %3666 = vmatprep.subr.bf16.mxu1 %v4525_v30 }
 0x527   : > { %3681 = vmatpush3.bf16.msra.mxu0 %v4069_v41 }
 0x528   : > { %3667 = vmatpush3.bf16.msra.mxu1 %v4068_v40  ;;  %3682 = vmatprep.subr.bf16.mxu0 %v4525_v30 }
 0x529   : > { %3668 = vmatprep.subr.bf16.mxu1 %v4525_v30 }
 0x52b   : > { %3683 = vmatpush3.bf16.msra.mxu0 %v4071_v43  ;;  %v3444_v43 = vld [vmem:[%s5617_s24] ss:$0 sm:$0xff] }
 0x52c   : > { %3669 = vmatpush3.bf16.msra.mxu1 %v4070_v42  ;;  %3684 = vmatprep.subr.bf16.mxu0 %v4525_v30 }
 0x52d   : > { %3670 = vmatprep.subr.bf16.mxu1 %v4525_v30 }
 0x52f   : > { %3685 = vmatpush3.bf16.msra.mxu0 %v4073_v45 }
 0x530   : > { %3671 = vmatpush3.bf16.msra.mxu1 %v4072_v44  ;;  %3686 = vmatprep.subr.bf16.mxu0 %v4525_v30 }
 0x531   : > { %3672 = vmatprep.subr.bf16.mxu1 %v4525_v30 }
 0x533   : > { %3687 = vmatpush3.bf16.msra.mxu0 %v4075_v47 }
 0x534   : > { %3673 = vmatpush3.bf16.msra.mxu1 %v4074_v46  ;;  %3688 = vmatprep.subr.bf16.mxu0 %v4525_v30 }
 0x535   : > { %3698 = vmatprep.subr.bf16.mxu1 %v4525_v30 }
 0x537   : > { %3675 = vmatmul.mubr.bf16.vlgmr.msra.gmra.mrb[8].mxu1 %v5305_v8  ;;  %3689 = vmatpush3.bf16.msra.mxu0 %v4076_v48 }
 0x538   : > { %3714 = vmatprep.mubr.msk.bf16.mxu1 %vm4526_vm10, %v4525_v30  ;;  %3690 = vmatprep.subr.bf16.mxu0 %v4525_v30 }
 0x539   : > { %3699 = vmatpush3.bf16.msra.mxu1 %v4079_v53 }
 0x53a   : > { %3700 = vmatprep.subr.bf16.mxu1 %v4525_v30 }
 0x53b   : > { %3691 = vmatpush3.bf16.msra.mxu0 %v4077_v49 }
 0x53c   : > { %3692 = vmatprep.subr.bf16.mxu0 %v4525_v30 }
 0x53d   : > { %3701 = vmatpush3.bf16.msra.mxu1 %v4080_v21 }
 0x53e   : > { %3702 = vmatprep.subr.bf16.mxu1 %v4525_v30 }
 0x53f   : > { %3693 = vmatpush3.bf16.msra.mxu0 %v4078_v50 }
 0x541   : > { %3703 = vmatpush3.bf16.msra.mxu1 %v4081_v54 }
 0x542   : > { %3695 = vmatmul.mubr.bf16.vlgmr.msra.gmra.mrb[12].mxu0 %v2682_v52  ;;  %3704 = vmatprep.subr.bf16.mxu1 %v4525_v30 }
 0x545   : > { %3705 = vmatpush3.bf16.msra.mxu1 %v4082_v55 }
 0x546   : > { %3706 = vmatprep.subr.bf16.mxu1 %v4525_v30 }
 0x549   : > { %3707 = vmatpush3.bf16.msra.mxu1 %v4083_v56 }
 0x54a   : > { %3708 = vmatprep.subr.bf16.mxu1 %v4525_v30 }
 0x54d   : > { %3709 = vmatpush3.bf16.msra.mxu1 %v4084_v57 }
 0x54e   : > { %3710 = vmatprep.subr.bf16.mxu1 %v4525_v30 }
 0x551   : > { %3711 = vmatpush3.bf16.msra.mxu1 %v4085_v58 }
 0x552   : > { %3712 = vmatprep.subr.bf16.mxu1 %v4525_v30  ;;  %v2783_v30 = vpop.permute.xlu1 %2782 }
 0x555   : > { %3713 = vmatpush3.bf16.msra.mxu1 %v4086_v59 }
 0x5b5   : > { %v2457_v60 = vpop.f32.mrb[0].mxu0 }
 0x5b6   : > { %v2459_v61 = vpop.f32.mrb[1].mxu0 }
 0x5b7   : > { %v2461_v62 = vpop.f32.mrb[2].mxu0 }
 0x5b8   : > { %v2462_v63 = vpop.f32.mrb[3].mxu0 }
 0x5ca   : > { %v2498_v0 = vpop.f32.mrb[0].mxu1 }
 0x5cb   : > { %v2499_v1 = vadd.f32 %v2498_v0, %v2457_v60  ;;  %v2500_v2 = vpop.f32.mrb[1].mxu1 }
 0x5cc   : > { %v2501_v3 = vadd.f32 %v2500_v2, %v2459_v61  ;;  %v2502_v4 = vpop.f32.mrb[2].mxu1 }
 0x5cd   : > { %v2503_v5 = vpop.f32.mrb[3].mxu1 }
 0x5ce   : > { %v3453_v5 = vld [vmem:[%s988_s30] ss:$0 sm:$0xff] }
 0x5d5   : > { %v2539_v6 = vpop.f32.mrb[4].mxu0 }
 0x5d6   : > { %v2540_v7 = vadd.f32 %v2539_v6, %v2499_v1  ;;  %v2541_v8 = vpop.f32.mrb[5].mxu0 }
 0x5d7   : > { %v2542_v9 = vadd.f32 %v2541_v8, %v2501_v3  ;;  %v2543_v10 = vpop.f32.mrb[6].mxu0 }
 0x5d8   : > { %v2544_v11 = vpop.f32.mrb[7].mxu0 }
 0x5d9   : > { %v2777_v32 = vmul.f32 %v2775_v29, %v2542_v9 }
 0x5ea   : > { %v3525_v12 = vpop.f32.mrb[4].mxu1 }
 0x5eb   : > { %v3526_v13 = vpop.f32.mrb[5].mxu1 }
 0x5ec   : > { %v3527_v14 = vadd.f32 %v3526_v13, %v3525_v12  ;;  %v3528_v15 = vpop.f32.mrb[6].mxu1 }
 0x5ed   : > { %v3529_v16 = vpop.f32.mrb[7].mxu1 }
 0x5f5   : > { %v3547_v17 = vpop.f32.mrb[8].mxu0 }
 0x5f6   : > { %v3548_v18 = vpop.f32.mrb[9].mxu0 }
 0x5f7   : > { %v3549_v19 = vadd.f32 %v3548_v18, %v3547_v17  ;;  %v3550_v20 = vpop.f32.mrb[10].mxu0 }
 0x5f8   : > { %v3551_v22 = vpop.f32.mrb[11].mxu0 }
 0x5f9   : > { %v2621_v23 = vadd.f32 %v3549_v19, %v3527_v14 }
 0x60a   : > { %v2660_v24 = vpop.f32.mrb[8].mxu1 }
 0x60b   : > { %v2661_v25 = vadd.f32 %v2660_v24, %v2621_v23  ;;  %v3676_v26 = vpop.f32.mrb[9].mxu1 }
 0x60c   : > { %v2663_v27 = vpop.f32.mrb[10].mxu1 }
 0x60d   : > { %v3677_v28 = vpop.f32.mrb[11].mxu1  ;;  %v2785_v36 = vmul.f32 %v2783_v30, %v2661_v25 }
 0x615   : > { %v2765_v31 = vpop.f32.mrb[12].mxu0 }
 0x616   : > { %v2766_v33 = vadd.f32 %v2765_v31, %v2540_v7  ;;  %v3696_v34 = vpop.f32.mrb[13].mxu0  ;;  %v3454_v7 = vld [vmem:[%s991_s0] ss:$0 sm:$0xff] }
 0x617   : > { %v2768_v35 = vpop.f32.mrb[14].mxu0 }
 0x618   : > { %v2778_v37 = vadd.f32 %v2777_v32, %v2766_v33  ;;  %v3697_v38 = vpop.f32.mrb[15].mxu0 }
 0x61a   : > { %v2786_v40 = vadd.f32 %v2785_v36, %v2778_v37 }
 0x61c   : > { %v2794_v41 = vadd.f32 %v3443_v39, %v2786_v40 }
 0x61e   : > { %v2811_v42 = vpack.c.bf16 %v2794_v41, %v2794_v41 }
 0x620   : > { %3715 = vmatmul.mubr.bf16.vlgmr.msra.gmra.mrb[12].mxu1 %v2811_v42 }
 0x6f3   : > { %v2901_v44 = vpop.f32.mrb[12].mxu1 }
 0x6f4   : > { %v2902_v45 = vadd.f32 %v3444_v43, %v2901_v44  ;;  %v3716_v46 = vpop.f32.mrb[13].mxu1 }
 0x6f5   : > { %v2904_v47 = vpop.f32.mrb[14].mxu1 }
 0x6f6   : > { %v2907_v48 = vrot.slane %v2902_v45, 4  ;;  %v2915_v49 = vmul.f32 %v2902_v45, %v2902_v45  ;;  %v3717_v50 = vpop.f32.mrb[15].mxu1 }
 0x6f8   : > { %v2908_v51 = vadd.f32 %v2907_v48, %v2902_v45  ;;  %v2916_v52 = vrot.slane %v2915_v49, 4 }
 0x6fa   : > { %v2909_v53 = vrot.slane %v2908_v51, 2  ;;  %v2917_v21 = vadd.f32 %v2916_v52, %v2915_v49 }
 0x6fc   : > { %v2910_v54 = vadd.f32 %v2909_v53, %v2908_v51  ;;  %v2918_v55 = vrot.slane %v2917_v21, 2 }
 0x6fe   : > { %v2911_v56 = vrot.slane %v2910_v54, 1  ;;  %v2919_v57 = vadd.f32 %v2918_v55, %v2917_v21 }
 0x700   : > { %v2912_v58 = vadd.f32 %v2911_v56, %v2910_v54  ;;  %v2920_v59 = vrot.slane %v2919_v57, 1 }
 0x702   : > { %v2914_v60 = vmul.f32 0.125, %v2912_v58  ;;  %v2921_v61 = vadd.f32 %v2920_v59, %v2919_v57 }
 0x704   : > { %v2922_v62 = vmul.f32 0.125, %v2921_v61  ;;  %v2923_v63 = vmul.f32 %v2914_v60, %v2914_v60  ;;  %v2926_v3 = vsub.f32 %v2902_v45, %v2914_v60 }
 0x706   : > { %v2924_v0 = vsub.f32 %v2922_v62, %v2923_v63 }
 0x708   : > { %v2925_v1 = vmax.f32 %v2924_v0, 0.0 }
 0x70a   : > { %v2927_v2 = vadd.f32 1e-05, %v2925_v1 }
 0x70c   : > { %4089 = vrsqrt.f32 %v2927_v2 }
 0x716   : > { %v4090_v4 = vpop.eup %4089 }
 0x717   : > { %v2929_v6 = vmul.f32 %v4090_v4, %v2926_v3 }
 0x719   : > { %v2937_v8 = vmul.f32 %v3453_v5, %v2929_v6 }
 0x71b   : > { %v2945_v9 = vadd.f32 %v3454_v7, %v2937_v8 }
 0x71d   : > { %v2946_v10 = vmax.f32 %v2945_v9, 0.0 }
 0x71f   : > { %2947 = vst [vmem:[#allocation2] sm:$0xff] %v2946_v10 }
 0x720 PF: > { %s5620_s8 = sld [smem:[#allocation39_spill]] }
 0x726   : > { %p2948_p8 = scmp.eq.s32.totalorder %s5620_s8, 1 }
 0x728   : > { %p2949_p7 = pnand %p2948_p8, %p1555_p2 }
 0x729   : > { %v2953_v11 = vld [vmem:[#allocation2] sm:$0xff] (!%p2949_p7) }
 0x72a   : > { %2952 = sbr.rel (%p2949_p7) target bundleno = 1841 (0x731), region = 155  ;;  %2954 = vst [vmem:[#allocation26] sm:$0xff] (!%p2949_p7), %v2953_v11 }
 0x731 PF: > { %s5622_s30 = sld [smem:[#allocation43_spill]]  ;;  %s4527_s20 = smov [#allocation26]  }
 0x732   : > { %s2962_s6 = sshll.u32 %s4527_s20, 4  ;;  %s2963_s6 = int_to_ptr.vmem [resolvable:$true] %s2962_s6 }
 0x733   : > { %s4357_s0 = scalar_lea.vmem %s2963_s6, 128  ;;  %p4364_p3 = scmp.lt.s32.totalorder %s2963_s6, %s2963_s6 }
 0x734   : > { %p4358_p10 = scmp.ne.s32.totalorder %s2963_s6, %s4357_s0  ;;  %p4365_p0 = scmp.lt.s32.totalorder %s4357_s0, %s4357_s0 }
 0x736   : > { %p4366_p12 = por %p4365_p0, %p4364_p3 }
 0x737   : > { %p3767_p11 = scmp.eq.s32.totalorder %s5622_s30, 3 }
 0x739   : > { %p4359_p9 = pnand %p4358_p10, %p3767_p11 }
 0x73b   : > { %p4360_p4 = pneg %p4359_p9 }
 0x73d   : > { %p4367_p5 = pnand %p4366_p12, %p4360_p4 }
 0x73f   : > { %4370 = shalt.err (!%p4367_p5)
}
 0x740   : > { %s5623_s26 = sld [smem:[#allocation68_spill]] }
 0x746   : > { %s4371_s9 = scalar_lea.hbm %s5623_s26, 128 }
 0x747   : > { %p4372_p6 = scmp.ne.s32.totalorder %s5623_s26, %s4371_s9  ;;  %p4377_p1 = scmp.lt.u32.totalorder %s4371_s9, %s5623_s26 }
 0x749   : > { %p4373_p13 = pnand %p4372_p6, %p3767_p11 }
 0x74b   : > { %p4374_p2 = pneg %p4373_p13 }
 0x74d   : > { %p4379_p8 = pnand %p4377_p1, %p4374_p2 }
 0x74f   : > { %4382 = shalt.err (!%p4379_p8)
}
 0x750   : > { %3738 = dma.vmem_to_hbm [thread:$0]  (%p3767_p11), %s2963_s6, 128, %s5623_s26, [#allocation14]  }
 0x751   : > { %4454 = dma.done.wait (%p3767_p11), [#allocation14], 128  }
 0x752   : > { %4456 = vsyncadd (%p3767_p11), [#allocation14], 4294967168 }
 0x753 PF: > { %s50_s2 = sadd.s32 1, %s4499_s2   ;;  %s5624_s7 = sld [smem:[#allocation34_spill]] }
 0x754   : > { %p47_p7 = scmp.ge.s32.totalorder %s50_s2, 6   ;;  %s5625_s4 = sld [smem:[#allocation35_spill]] }
 0x755   : > { %s5626_s29 = sld [smem:[#allocation47_spill]]  ;;  %s5627_s30 = sld [smem:[#allocation36_spill]] }
 0x756   : > { %s5628_s0 = sld [smem:[#allocation37_spill]]  ;;  %s5629_s21 = sld [smem:[#allocation46_spill]] }
 0x757   : > { %s5630_s1 = sld [smem:[#allocation40_spill]]  ;;  %s5631_s22 = sld [smem:[#allocation41_spill]] }
 0x758   : > { %s5632_s23 = sld [smem:[#allocation44_spill]]  ;;  %s5633_s24 = sld [smem:[#allocation45_spill]] }
 0x759   :  { %49 = sbr.rel (!%p47_p7) target bundleno = 44 (0x2c), region = 280 }
 0x760   :  { %2975 = vsyncpa [#allocation13], 1 }
 0x761   :  { %2977 = vsyncpa [#allocation13 + $0x1], 1 }
 0x762   :  { %2978 = vsyncpa [#allocation16], 1 }
 0x763   :  { %2980 = vsyncpa [#allocation16 + $0x1], 1 }
 0x764   :  { %2981 = vsyncpa [#allocation19], 1 }
 0x765   :  { %2983 = vsyncpa [#allocation19 + $0x1], 1 }
 0x766   :  { %2984 = vsyncpa [#allocation22], 1 }
 0x767   :  { %2986 = vsyncpa [#allocation22 + $0x1], 1 }
 0x768   :  { %2987 = vsyncpa [#allocation25], 1 }
 0x769   :  { %2989 = vsyncpa [#allocation25 + $0x1], 1 }
 0x76a   :  { %2990 = vsyncpa [#allocation14], 1 }
 0x76b   :  { %2992 = vsyncpa [#allocation14 + $0x1], 1 }

</bundles_post_ra>
